<compile_context>
chip_gen: v6e
topology: v6e:2x2x1
jax: 0.10.0
libtpu: 0.0.40
codegen_flags: <defaults>
</compile_context>

<pallas_src>
import jax
import jax.numpy as jnp
from jax.experimental import pallas as pl
from jax.experimental.pallas import tpu as pltpu

# ---------------- config (mirrors SegRNN args) ------------------------------
PATCH_LEN = 8
WINDOW    = 64
HIDDEN    = 32
LAYERS    = 2                       # kernel below is specialized to 2 layers
CHANNELS  = 4
N_CLASSES = 3
HORIZON   = 16
DIM       = PATCH_LEN // 2          # preprocess == 'fft'  ->  dim = patch_len // 2
SEG       = WINDOW // PATCH_LEN     # encoder sequence length (8)
PRED_T    = HORIZON // PATCH_LEN    # prediction steps (2)
IN_DIM    = CHANNELS * DIM          # encoder input feature size (16)

# TODO(synk): the preprocess=='raw' branch uses a `Patching` module whose code
# is not part of the provided snippet; this script implements the 'fft' branch
# (forward is a no-op pass-through for the preprocessing step).


# ---------------- kernel -----------------------------------------------------
def segrnn_kernel(x_ref, wih0_ref, b0_ref, whh0_ref, wf_ref, bf_ref,
                  dec_w_ref, dec_b_ref, fc_w_ref, fc_b_ref,
                  prob_ref, pred_ref):
    T, B, F = x_ref.shape
    H  = HIDDEN
    H2, H3, H4 = 2 * H, 3 * H, 4 * H

    # ---- hoisted weight / bias loads (once, outside the unrolled loops) ----
    wih0 = wih0_ref[...]                                   # (IN_DIM, 3H)
    whh0 = whh0_ref[...]                                   # (H, 3H)
    bih0 = b0_ref[0:1, :]                                  # (1, 3H)
    bhh0 = jnp.broadcast_to(b0_ref[1:2, :], (B, H3))       # (B, 3H), hoisted bcast
    w_l1 = wf_ref[0]                                       # (2H, 4H)
    w_p0 = wf_ref[1]
    w_p1 = wf_ref[2]
    b_l1 = jnp.broadcast_to(bf_ref[0:1, :], (B, H4))
    b_p0 = jnp.broadcast_to(bf_ref[1:2, :], (B, H4))
    b_p1 = jnp.broadcast_to(bf_ref[2:3, :], (B, H4))
    dec_w = dec_w_ref[...]
    dec_b = dec_b_ref[...]
    fc_w  = fc_w_ref[...]
    fc_b  = jnp.broadcast_to(fc_b_ref[...], (B, fc_w.shape[1]))

    # ---- layer-0 input projection hoisted: one (T*B, 16) @ (16, 3H) dot ----
    x_flat  = x_ref[...].reshape(T * B, F)
    gi0_all = jnp.dot(x_flat, wih0, preferred_element_type=jnp.float32) + bih0

    def fused_step(xin, h, W, b):
        # single (B, 2H) @ (2H, 4H) MXU dot per recurrent step.
        # column layout of W/b: [ r|z fused | n (input part) | n (hidden part) ]
        xh = jnp.concatenate([xin, h], axis=-1)
        g  = jnp.dot(xh, W, preferred_element_type=jnp.float32) + b
        s  = jax.nn.sigmoid(g[:, :H2])            # full-width r|z sigmoid
        r, z = s[:, :H], s[:, H:H2]
        n  = jnp.tanh(g[:, H2:H3] + r * g[:, H3:])
        return (1.0 - z) * n + z * h

    # ---- stacked GRU encoder (time-major, statically unrolled) --------------
    h0 = jnp.zeros((B, H), jnp.float32)
    h1 = jnp.zeros((B, H), jnp.float32)
    for t in range(T):
        # layer 0: input gates precomputed, only the recurrent dot per step
        gi0 = gi0_all[t * B:(t + 1) * B, :]
        gh0 = jnp.dot(h0, whh0, preferred_element_type=jnp.float32) + bhh0
        s   = jax.nn.sigmoid(gi0[:, :H2] + gh0[:, :H2])
        r, z = s[:, :H], s[:, H:H2]
        n   = jnp.tanh(gi0[:, H2:] + r * gh0[:, H2:])
        h0  = (1.0 - z) * n + z * h0
        # layer 1: fused single-dot step
        h1 = fused_step(h0, h1, w_l1, b_l1)

    # ---- classification head:  z[-1] @ W_dec + b_dec ------------------------
    prob_ref[...] = (jnp.dot(h1, dec_w, preferred_element_type=jnp.float32)
                     + dec_b)

    # ---- autoregressive predictor (GRUCell per layer) + fc ------------------
    y = jnp.zeros((B, H), jnp.float32)
    hs = [h0, h1]
    pcells = [(w_p0, b_p0), (w_p1, b_p1)]
    outs = []
    for _t in range(PRED_T):
        for l in range(LAYERS):
            y = fused_step(y, hs[l], pcells[l][0], pcells[l][1])
            hs[l] = y
        outs.append(jnp.dot(y, fc_w, preferred_element_type=jnp.float32) + fc_b)
    # single lane-dense store: (B, PRED_T * C * DIM)
    pred_ref[...] = jnp.concatenate(outs, axis=-1)


# ---------------- parameter init (deterministic, unfused PyTorch layout) -----
PARAM_ORDER = [
    "e_wih0", "e_whh0", "e_bih0", "e_bhh0",
    "e_wih1", "e_whh1", "e_bih1", "e_bhh1",
    "dec_w", "dec_b",
    "p_wih0", "p_whh0", "p_bih0", "p_bhh0",
    "p_wih1", "p_whh1", "p_bih1", "p_bhh1",
    "fc_w", "fc_b",
]


def init_params(key):
    k = 1.0 / jnp.sqrt(jnp.float32(HIDDEN))
    shapes = {
        # encoder GRU layer 0 / 1  (weights stored transposed: (in, 3H))
        "e_wih0": (IN_DIM, 3 * HIDDEN), "e_whh0": (HIDDEN, 3 * HIDDEN),
        "e_bih0": (1, 3 * HIDDEN),      "e_bhh0": (1, 3 * HIDDEN),
        "e_wih1": (HIDDEN, 3 * HIDDEN), "e_whh1": (HIDDEN, 3 * HIDDEN),
        "e_bih1": (1, 3 * HIDDEN),      "e_bhh1": (1, 3 * HIDDEN),
        # decoder linear
        "dec_w": (HIDDEN, N_CLASSES),   "dec_b": (1, N_CLASSES),
        # predictor GRUCells (one per layer)
        "p_wih0": (HIDDEN, 3 * HIDDEN), "p_whh0": (HIDDEN, 3 * HIDDEN),
        "p_bih0": (1, 3 * HIDDEN),      "p_bhh0": (1, 3 * HIDDEN),
        "p_wih1": (HIDDEN, 3 * HIDDEN), "p_whh1": (HIDDEN, 3 * HIDDEN),
        "p_bih1": (1, 3 * HIDDEN),      "p_bhh1": (1, 3 * HIDDEN),
        # fc: hidden -> channels * dim
        "fc_w": (HIDDEN, CHANNELS * DIM), "fc_b": (1, CHANNELS * DIM),
    }
    params = {}
    keys = jax.random.split(key, len(PARAM_ORDER))
    for kk, name in zip(keys, PARAM_ORDER):
        params[name] = jax.random.uniform(kk, shapes[name], jnp.float32, -k, k)
    return params


# ---------------- parameter packing (fused slabs for the kernel) --------------
def _pack_params(p):
    H = HIDDEN

    def fuse(wih, whh, bih, bhh):
        # (2H, 4H) stacked weight: rows [0:H]=x, [H:2H]=h;
        # cols [0:2H]=r|z (x+h), [2H:3H]=n from x only, [3H:4H]=n from h only.
        W = jnp.zeros((2 * H, 4 * H), jnp.float32)
        W = W.at[:H, :2 * H].set(wih[:, :2 * H])
        W = W.at[H:, :2 * H].set(whh[:, :2 * H])
        W = W.at[:H, 2 * H:3 * H].set(wih[:, 2 * H:])
        W = W.at[H:, 3 * H:].set(whh[:, 2 * H:])
        b = jnp.concatenate([bih[:, :2 * H] + bhh[:, :2 * H],
                             bih[:, 2 * H:], bhh[:, 2 * H:]], axis=-1)  # (1, 4H)
        return W, b

    w1,  b1  = fuse(p["e_wih1"], p["e_whh1"], p["e_bih1"], p["e_bhh1"])
    wp0, bp0 = fuse(p["p_wih0"], p["p_whh0"], p["p_bih0"], p["p_bhh0"])
    wp1, bp1 = fuse(p["p_wih1"], p["p_whh1"], p["p_bih1"], p["p_bhh1"])

    wf = jnp.stack([w1, wp0, wp1], axis=0)                 # (3, 2H, 4H)
    bf = jnp.concatenate([b1, bp0, bp1], axis=0)           # (3, 4H)
    b0 = jnp.concatenate([p["e_bih0"], p["e_bhh0"]], axis=0)  # (2, 3H)

    return (p["e_wih0"], b0, p["e_whh0"], wf, bf,
            p["dec_w"], p["dec_b"], p["fc_w"], p["fc_b"])


# ---------------- wrapper -----------------------------------------------------
def _full_spec(arr):
    nd = arr.ndim
    return pl.BlockSpec(arr.shape, lambda b: (0,) * nd)


@jax.jit
def segrnn_forward(x, params):
    """x: (bs, SEG, CHANNELS, DIM)  -- fft-preprocessed segments."""
    bs = x.shape[0]
    # permute(1,0,2,3).reshape(window//patch_len, bs, channels*dim)
    xk = jnp.transpose(x, (1, 0, 2, 3)).reshape(SEG, bs, CHANNELS * DIM)

    # pad batch to a sublane-friendly multiple of 8; tile for the batch grid.
    B_pad = max(8, ((bs + 7) // 8) * 8)
    TB = B_pad if B_pad <= 256 else 256
    B_pad = ((B_pad + TB - 1) // TB) * TB
    if B_pad != bs:
        xk = jnp.pad(xk, ((0, 0), (0, B_pad - bs), (0, 0)))

    wih0, b0, whh0, wf, bf, dec_w, dec_b, fc_w, fc_b = _pack_params(params)

    grid = (B_pad // TB,)
    in_specs = [
        pl.BlockSpec((SEG, TB, IN_DIM), lambda b: (0, b, 0)),
        _full_spec(wih0), _full_spec(b0), _full_spec(whh0),
        _full_spec(wf), _full_spec(bf),
        _full_spec(dec_w), _full_spec(dec_b), _full_spec(fc_w), _full_spec(fc_b),
    ]
    out_specs = (
        pl.BlockSpec((TB, N_CLASSES), lambda b: (b, 0)),
        pl.BlockSpec((TB, PRED_T * CHANNELS * DIM), lambda b: (b, 0)),
    )

    prob, pred_flat = pl.pallas_call(
        segrnn_kernel,
        out_shape=(
            jax.ShapeDtypeStruct((B_pad, N_CLASSES), jnp.float32),
            jax.ShapeDtypeStruct((B_pad, PRED_T * CHANNELS * DIM), jnp.float32),
        ),
        grid=grid,
        in_specs=in_specs,
        out_specs=out_specs,
        compiler_params=pltpu.CompilerParams(
            dimension_semantics=("parallel",)),
    )(xk, wih0, b0, whh0, wf, bf, dec_w, dec_b, fc_w, fc_b)

    # squeeze(dim=-1) is a no-op for N_CLASSES > 1
    prob = prob[:bs]
    pred = pred_flat[:bs].reshape(bs, PRED_T, CHANNELS, DIM)
    return {"prob": prob, "pred": pred}


# ---------------- pure-JAX reference (for correctness check) ------------------
def segrnn_ref(x, params):
    bs = x.shape[0]
    xk = jnp.transpose(x, (1, 0, 2, 3)).reshape(SEG, bs, CHANNELS * DIM)
    H = HIDDEN

    def gru(xt, h, wih, whh, bih, bhh):
        gi = xt @ wih + bih
        gh = h @ whh + bhh
        r = jax.nn.sigmoid(gi[:, :H] + gh[:, :H])
        z = jax.nn.sigmoid(gi[:, H:2 * H] + gh[:, H:2 * H])
        n = jnp.tanh(gi[:, 2 * H:] + r * gh[:, 2 * H:])
        return (1.0 - z) * n + z * h

    p = params
    enc = [(p["e_wih0"], p["e_whh0"], p["e_bih0"], p["e_bhh0"]),
           (p["e_wih1"], p["e_whh1"], p["e_bih1"], p["e_bhh1"])]
    prd = [(p["p_wih0"], p["p_whh0"], p["p_bih0"], p["p_bhh0"]),
           (p["p_wih1"], p["p_whh1"], p["p_bih1"], p["p_bhh1"])]

    hs = [jnp.zeros((bs, H), jnp.float32) for _ in range(LAYERS)]
    for t in range(SEG):
        inp = xk[t]
        for l, w in enumerate(enc):
            hs[l] = gru(inp, hs[l], *w)
            inp = hs[l]
    prob = hs[-1] @ p["dec_w"] + p["dec_b"]

    y = jnp.zeros((bs, H), jnp.float32)
    outs = []
    for t in range(PRED_T):
        for l, w in enumerate(prd):
            y = gru(y, hs[l], *w)
            hs[l] = y
        outs.append(y @ p["fc_w"] + p["fc_b"])
    pred = jnp.stack(outs, 0).reshape(PRED_T, bs, CHANNELS, DIM).transpose(1, 0, 2, 3)
    return {"prob": prob, "pred": pred}


# ---------------- main ---------------------------------------------------------
if __name__ == "__main__":
    key = jax.random.PRNGKey(0)
    kx, kp = jax.random.split(key)

    bs = 2
    x = jax.random.normal(kx, (bs, SEG, CHANNELS, DIM), jnp.float32)
    params = init_params(kp)

    out = segrnn_forward(x, params)
    jax.block_until_ready(out)

    ref = segrnn_ref(x, params)
    assert jnp.allclose(out["prob"], ref["prob"], atol=1e-4, rtol=1e-4)
    assert jnp.allclose(out["pred"], ref["pred"], atol=1e-4, rtol=1e-4)
    assert out["prob"].shape == (bs, N_CLASSES)
    assert out["pred"].shape == (bs, PRED_T, CHANNELS, DIM)

    print("KERNEL_OK")
</pallas_src>

<mosaic_0001>
module attributes {stable_mosaic.version = 11 : i64} {
  func.func @segrnn_kernel(%arg0: i32, %arg1: memref<8x8x16xf32, #tpu.memory_space<vmem>>, %arg2: memref<16x96xf32, #tpu.memory_space<vmem>>, %arg3: memref<2x96xf32, #tpu.memory_space<vmem>>, %arg4: memref<32x96xf32, #tpu.memory_space<vmem>>, %arg5: memref<3x64x128xf32, #tpu.memory_space<vmem>>, %arg6: memref<3x128xf32, #tpu.memory_space<vmem>>, %arg7: memref<32x3xf32, #tpu.memory_space<vmem>>, %arg8: memref<1x3xf32, #tpu.memory_space<vmem>>, %arg9: memref<32x16xf32, #tpu.memory_space<vmem>>, %arg10: memref<1x16xf32, #tpu.memory_space<vmem>>, %arg11: memref<8x3xf32, #tpu.memory_space<vmem>>, %arg12: memref<8x32xf32, #tpu.memory_space<vmem>>) attributes {dimension_semantics = [#tpu.dimension_semantics<parallel>], iteration_bounds = array<i64: 1>, scalar_prefetch = 0 : i64, scratch_operands = 0 : i64, tpu.core_type = #tpu.core_type<tc>, window_params = [{transform_indices = @transform_0, window_bounds = array<i64: 8, 8, 16>}, {pipeline_mode = #tpu.pipeline_mode<synchronous>, transform_indices = @transform_1, window_bounds = array<i64: 16, 96>}, {pipeline_mode = #tpu.pipeline_mode<synchronous>, transform_indices = @transform_2, window_bounds = array<i64: 2, 96>}, {pipeline_mode = #tpu.pipeline_mode<synchronous>, transform_indices = @transform_3, window_bounds = array<i64: 32, 96>}, {pipeline_mode = #tpu.pipeline_mode<synchronous>, transform_indices = @transform_4, window_bounds = array<i64: 3, 64, 128>}, {pipeline_mode = #tpu.pipeline_mode<synchronous>, transform_indices = @transform_5, window_bounds = array<i64: 3, 128>}, {pipeline_mode = #tpu.pipeline_mode<synchronous>, transform_indices = @transform_6, window_bounds = array<i64: 32, 3>}, {pipeline_mode = #tpu.pipeline_mode<synchronous>, transform_indices = @transform_7, window_bounds = array<i64: 1, 3>}, {pipeline_mode = #tpu.pipeline_mode<synchronous>, transform_indices = @transform_8, window_bounds = array<i64: 32, 16>}, {pipeline_mode = #tpu.pipeline_mode<synchronous>, transform_indices = @transform_9, window_bounds = array<i64: 1, 16>}, {transform_indices = @transform_10, window_bounds = array<i64: 8, 3>}, {transform_indices = @transform_11, window_bounds = array<i64: 8, 32>}]} {
    %c0 = arith.constant 0 : index
    %c0_0 = arith.constant 0 : index
    %0 = vector.load %arg2[%c0, %c0_0] : memref<16x96xf32, #tpu.memory_space<vmem>>, vector<16x96xf32>
    %c0_1 = arith.constant 0 : index
    %c0_2 = arith.constant 0 : index
    %1 = vector.load %arg4[%c0_1, %c0_2] : memref<32x96xf32, #tpu.memory_space<vmem>>, vector<32x96xf32>
    %c0_3 = arith.constant 0 : index
    %c0_4 = arith.constant 0 : index
    %2 = vector.load %arg3[%c0_3, %c0_4] : memref<2x96xf32, #tpu.memory_space<vmem>>, vector<1x96xf32>
    %c1 = arith.constant 1 : index
    %c0_5 = arith.constant 0 : index
    %3 = vector.load %arg3[%c1, %c0_5] : memref<2x96xf32, #tpu.memory_space<vmem>>, vector<1x96xf32>
    %4 = vector.shape_cast %3 : vector<1x96xf32> to vector<1x96xf32>
    %5 = vector.broadcast %4 : vector<1x96xf32> to vector<8x96xf32>
    %c0_6 = arith.constant 0 : index
    %c0_7 = arith.constant 0 : index
    %c0_8 = arith.constant 0 : index
    %6 = vector.load %arg5[%c0_6, %c0_7, %c0_8] : memref<3x64x128xf32, #tpu.memory_space<vmem>>, vector<1x64x128xf32>
    %7 = vector.shape_cast %6 : vector<1x64x128xf32> to vector<64x128xf32>
    %c1_9 = arith.constant 1 : index
    %c0_10 = arith.constant 0 : index
    %c0_11 = arith.constant 0 : index
    %8 = vector.load %arg5[%c1_9, %c0_10, %c0_11] : memref<3x64x128xf32, #tpu.memory_space<vmem>>, vector<1x64x128xf32>
    %9 = vector.shape_cast %8 : vector<1x64x128xf32> to vector<64x128xf32>
    %c2 = arith.constant 2 : index
    %c0_12 = arith.constant 0 : index
    %c0_13 = arith.constant 0 : index
    %10 = vector.load %arg5[%c2, %c0_12, %c0_13] : memref<3x64x128xf32, #tpu.memory_space<vmem>>, vector<1x64x128xf32>
    %11 = vector.shape_cast %10 : vector<1x64x128xf32> to vector<64x128xf32>
    %c0_14 = arith.constant 0 : index
    %c0_15 = arith.constant 0 : index
    %12 = vector.load %arg6[%c0_14, %c0_15] : memref<3x128xf32, #tpu.memory_space<vmem>>, vector<1x128xf32>
    %13 = vector.shape_cast %12 : vector<1x128xf32> to vector<1x128xf32>
    %14 = vector.broadcast %13 : vector<1x128xf32> to vector<8x128xf32>
    %c1_16 = arith.constant 1 : index
    %c0_17 = arith.constant 0 : index
    %15 = vector.load %arg6[%c1_16, %c0_17] : memref<3x128xf32, #tpu.memory_space<vmem>>, vector<1x128xf32>
    %16 = vector.shape_cast %15 : vector<1x128xf32> to vector<1x128xf32>
    %17 = vector.broadcast %16 : vector<1x128xf32> to vector<8x128xf32>
    %c2_18 = arith.constant 2 : index
    %c0_19 = arith.constant 0 : index
    %18 = vector.load %arg6[%c2_18, %c0_19] : memref<3x128xf32, #tpu.memory_space<vmem>>, vector<1x128xf32>
    %19 = vector.shape_cast %18 : vector<1x128xf32> to vector<1x128xf32>
    %20 = vector.broadcast %19 : vector<1x128xf32> to vector<8x128xf32>
    %c0_20 = arith.constant 0 : index
    %c0_21 = arith.constant 0 : index
    %21 = vector.load %arg7[%c0_20, %c0_21] : memref<32x3xf32, #tpu.memory_space<vmem>>, vector<32x3xf32>
    %c0_22 = arith.constant 0 : index
    %c0_23 = arith.constant 0 : index
    %22 = vector.load %arg8[%c0_22, %c0_23] : memref<1x3xf32, #tpu.memory_space<vmem>>, vector<1x3xf32>
    %c0_24 = arith.constant 0 : index
    %c0_25 = arith.constant 0 : index
    %23 = vector.load %arg9[%c0_24, %c0_25] : memref<32x16xf32, #tpu.memory_space<vmem>>, vector<32x16xf32>
    %c0_26 = arith.constant 0 : index
    %c0_27 = arith.constant 0 : index
    %24 = vector.load %arg10[%c0_26, %c0_27] : memref<1x16xf32, #tpu.memory_space<vmem>>, vector<1x16xf32>
    %25 = vector.shape_cast %24 : vector<1x16xf32> to vector<1x16xf32>
    %26 = vector.broadcast %25 : vector<1x16xf32> to vector<8x16xf32>
    %c0_28 = arith.constant 0 : index
    %c0_29 = arith.constant 0 : index
    %c0_30 = arith.constant 0 : index
    %27 = vector.load %arg1[%c0_28, %c0_29, %c0_30] : memref<8x8x16xf32, #tpu.memory_space<vmem>>, vector<8x8x16xf32>
    %28 = vector.shape_cast %27 : vector<8x8x16xf32> to vector<64x16xf32>
    %cst = arith.constant dense<0.000000e+00> : vector<64x96xf32>
    %29 = tpu.matmul %28, %0, %cst {dimension_numbers = #tpu.dot_dimension_numbers<[1], [0], [0], [1], [0, 0, 1, 1], [], []>} : vector<64x16xf32>, vector<16x96xf32>, vector<64x96xf32> -> vector<64x96xf32>
    %30 = vector.broadcast %2 : vector<1x96xf32> to vector<64x96xf32>
    %31 = arith.addf %29, %30 : vector<64x96xf32>
    %cst_31 = arith.constant 0.000000e+00 : f32
    %32 = vector.broadcast %cst_31 : f32 to vector<8x32xf32>
    %cst_32 = arith.constant 0.000000e+00 : f32
    %33 = vector.broadcast %cst_32 : f32 to vector<8x32xf32>
    %34 = vector.extract_strided_slice %31 {offsets = [0, 0], sizes = [8, 96], strides = [1, 1]} : vector<64x96xf32> to vector<8x96xf32>
    %cst_33 = arith.constant dense<0.000000e+00> : vector<8x96xf32>
    %35 = tpu.matmul %32, %1, %cst_33 {dimension_numbers = #tpu.dot_dimension_numbers<[1], [0], [0], [1], [0, 0, 1, 1], [], []>} : vector<8x32xf32>, vector<32x96xf32>, vector<8x96xf32> -> vector<8x96xf32>
    %36 = arith.addf %35, %5 : vector<8x96xf32>
    %37 = vector.extract_strided_slice %34 {offsets = [0, 0], sizes = [8, 64], strides = [1, 1]} : vector<8x96xf32> to vector<8x64xf32>
    %38 = vector.extract_strided_slice %36 {offsets = [0, 0], sizes = [8, 64], strides = [1, 1]} : vector<8x96xf32> to vector<8x64xf32>
    %39 = arith.addf %37, %38 : vector<8x64xf32>
    %40 = arith.negf %39 : vector<8x64xf32>
    %41 = math.exp %40 : vector<8x64xf32>
    %cst_34 = arith.constant 1.000000e+00 : f32
    %42 = vector.broadcast %cst_34 : f32 to vector<8x64xf32>
    %43 = arith.addf %42, %41 : vector<8x64xf32>
    %44 = arith.divf %42, %43 : vector<8x64xf32>
    %45 = vector.extract_strided_slice %44 {offsets = [0, 0], sizes = [8, 32], strides = [1, 1]} : vector<8x64xf32> to vector<8x32xf32>
    %46 = vector.extract_strided_slice %44 {offsets = [0, 32], sizes = [8, 32], strides = [1, 1]} : vector<8x64xf32> to vector<8x32xf32>
    %47 = vector.extract_strided_slice %34 {offsets = [0, 64], sizes = [8, 32], strides = [1, 1]} : vector<8x96xf32> to vector<8x32xf32>
    %48 = vector.extract_strided_slice %36 {offsets = [0, 64], sizes = [8, 32], strides = [1, 1]} : vector<8x96xf32> to vector<8x32xf32>
    %49 = arith.mulf %45, %48 : vector<8x32xf32>
    %50 = arith.addf %47, %49 : vector<8x32xf32>
    %51 = math.tanh %50 : vector<8x32xf32>
    %cst_35 = arith.constant 1.000000e+00 : f32
    %52 = vector.broadcast %cst_35 : f32 to vector<8x32xf32>
    %53 = arith.subf %52, %46 : vector<8x32xf32>
    %54 = arith.mulf %53, %51 : vector<8x32xf32>
    %55 = arith.mulf %46, %32 : vector<8x32xf32>
    %56 = arith.addf %54, %55 : vector<8x32xf32>
    %57 = tpu.concatenate %56, %33 in 1 : vector<8x32xf32>, vector<8x32xf32> -> vector<8x64xf32>
    %cst_36 = arith.constant dense<0.000000e+00> : vector<8x128xf32>
    %58 = tpu.matmul %57, %7, %cst_36 {dimension_numbers = #tpu.dot_dimension_numbers<[1], [0], [0], [1], [0, 0, 1, 1], [], []>} : vector<8x64xf32>, vector<64x128xf32>, vector<8x128xf32> -> vector<8x128xf32>
    %59 = arith.addf %58, %14 : vector<8x128xf32>
    %60 = vector.extract_strided_slice %59 {offsets = [0, 0], sizes = [8, 64], strides = [1, 1]} : vector<8x128xf32> to vector<8x64xf32>
    %61 = arith.negf %60 : vector<8x64xf32>
    %62 = math.exp %61 : vector<8x64xf32>
    %cst_37 = arith.constant 1.000000e+00 : f32
    %63 = vector.broadcast %cst_37 : f32 to vector<8x64xf32>
    %64 = arith.addf %63, %62 : vector<8x64xf32>
    %65 = arith.divf %63, %64 : vector<8x64xf32>
    %66 = vector.extract_strided_slice %65 {offsets = [0, 0], sizes = [8, 32], strides = [1, 1]} : vector<8x64xf32> to vector<8x32xf32>
    %67 = vector.extract_strided_slice %65 {offsets = [0, 32], sizes = [8, 32], strides = [1, 1]} : vector<8x64xf32> to vector<8x32xf32>
    %68 = vector.extract_strided_slice %59 {offsets = [0, 64], sizes = [8, 32], strides = [1, 1]} : vector<8x128xf32> to vector<8x32xf32>
    %69 = vector.extract_strided_slice %59 {offsets = [0, 96], sizes = [8, 32], strides = [1, 1]} : vector<8x128xf32> to vector<8x32xf32>
    %70 = arith.mulf %66, %69 : vector<8x32xf32>
    %71 = arith.addf %68, %70 : vector<8x32xf32>
    %72 = math.tanh %71 : vector<8x32xf32>
    %cst_38 = arith.constant 1.000000e+00 : f32
    %73 = vector.broadcast %cst_38 : f32 to vector<8x32xf32>
    %74 = arith.subf %73, %67 : vector<8x32xf32>
    %75 = arith.mulf %74, %72 : vector<8x32xf32>
    %76 = arith.mulf %67, %33 : vector<8x32xf32>
    %77 = arith.addf %75, %76 : vector<8x32xf32>
    %78 = vector.extract_strided_slice %31 {offsets = [8, 0], sizes = [8, 96], strides = [1, 1]} : vector<64x96xf32> to vector<8x96xf32>
    %cst_39 = arith.constant dense<0.000000e+00> : vector<8x96xf32>
    %79 = tpu.matmul %56, %1, %cst_39 {dimension_numbers = #tpu.dot_dimension_numbers<[1], [0], [0], [1], [0, 0, 1, 1], [], []>} : vector<8x32xf32>, vector<32x96xf32>, vector<8x96xf32> -> vector<8x96xf32>
    %80 = arith.addf %79, %5 : vector<8x96xf32>
    %81 = vector.extract_strided_slice %78 {offsets = [0, 0], sizes = [8, 64], strides = [1, 1]} : vector<8x96xf32> to vector<8x64xf32>
    %82 = vector.extract_strided_slice %80 {offsets = [0, 0], sizes = [8, 64], strides = [1, 1]} : vector<8x96xf32> to vector<8x64xf32>
    %83 = arith.addf %81, %82 : vector<8x64xf32>
    %84 = arith.negf %83 : vector<8x64xf32>
    %85 = math.exp %84 : vector<8x64xf32>
    %cst_40 = arith.constant 1.000000e+00 : f32
    %86 = vector.broadcast %cst_40 : f32 to vector<8x64xf32>
    %87 = arith.addf %86, %85 : vector<8x64xf32>
    %88 = arith.divf %86, %87 : vector<8x64xf32>
    %89 = vector.extract_strided_slice %88 {offsets = [0, 0], sizes = [8, 32], strides = [1, 1]} : vector<8x64xf32> to vector<8x32xf32>
    %90 = vector.extract_strided_slice %88 {offsets = [0, 32], sizes = [8, 32], strides = [1, 1]} : vector<8x64xf32> to vector<8x32xf32>
    %91 = vector.extract_strided_slice %78 {offsets = [0, 64], sizes = [8, 32], strides = [1, 1]} : vector<8x96xf32> to vector<8x32xf32>
    %92 = vector.extract_strided_slice %80 {offsets = [0, 64], sizes = [8, 32], strides = [1, 1]} : vector<8x96xf32> to vector<8x32xf32>
    %93 = arith.mulf %89, %92 : vector<8x32xf32>
    %94 = arith.addf %91, %93 : vector<8x32xf32>
    %95 = math.tanh %94 : vector<8x32xf32>
    %cst_41 = arith.constant 1.000000e+00 : f32
    %96 = vector.broadcast %cst_41 : f32 to vector<8x32xf32>
    %97 = arith.subf %96, %90 : vector<8x32xf32>
    %98 = arith.mulf %97, %95 : vector<8x32xf32>
    %99 = arith.mulf %90, %56 : vector<8x32xf32>
    %100 = arith.addf %98, %99 : vector<8x32xf32>
    %101 = tpu.concatenate %100, %77 in 1 : vector<8x32xf32>, vector<8x32xf32> -> vector<8x64xf32>
    %cst_42 = arith.constant dense<0.000000e+00> : vector<8x128xf32>
    %102 = tpu.matmul %101, %7, %cst_42 {dimension_numbers = #tpu.dot_dimension_numbers<[1], [0], [0], [1], [0, 0, 1, 1], [], []>} : vector<8x64xf32>, vector<64x128xf32>, vector<8x128xf32> -> vector<8x128xf32>
    %103 = arith.addf %102, %14 : vector<8x128xf32>
    %104 = vector.extract_strided_slice %103 {offsets = [0, 0], sizes = [8, 64], strides = [1, 1]} : vector<8x128xf32> to vector<8x64xf32>
    %105 = arith.negf %104 : vector<8x64xf32>
    %106 = math.exp %105 : vector<8x64xf32>
    %cst_43 = arith.constant 1.000000e+00 : f32
    %107 = vector.broadcast %cst_43 : f32 to vector<8x64xf32>
    %108 = arith.addf %107, %106 : vector<8x64xf32>
    %109 = arith.divf %107, %108 : vector<8x64xf32>
    %110 = vector.extract_strided_slice %109 {offsets = [0, 0], sizes = [8, 32], strides = [1, 1]} : vector<8x64xf32> to vector<8x32xf32>
    %111 = vector.extract_strided_slice %109 {offsets = [0, 32], sizes = [8, 32], strides = [1, 1]} : vector<8x64xf32> to vector<8x32xf32>
    %112 = vector.extract_strided_slice %103 {offsets = [0, 64], sizes = [8, 32], strides = [1, 1]} : vector<8x128xf32> to vector<8x32xf32>
    %113 = vector.extract_strided_slice %103 {offsets = [0, 96], sizes = [8, 32], strides = [1, 1]} : vector<8x128xf32> to vector<8x32xf32>
    %114 = arith.mulf %110, %113 : vector<8x32xf32>
    %115 = arith.addf %112, %114 : vector<8x32xf32>
    %116 = math.tanh %115 : vector<8x32xf32>
    %cst_44 = arith.constant 1.000000e+00 : f32
    %117 = vector.broadcast %cst_44 : f32 to vector<8x32xf32>
    %118 = arith.subf %117, %111 : vector<8x32xf32>
    %119 = arith.mulf %118, %116 : vector<8x32xf32>
    %120 = arith.mulf %111, %77 : vector<8x32xf32>
    %121 = arith.addf %119, %120 : vector<8x32xf32>
    %122 = vector.extract_strided_slice %31 {offsets = [16, 0], sizes = [8, 96], strides = [1, 1]} : vector<64x96xf32> to vector<8x96xf32>
    %cst_45 = arith.constant dense<0.000000e+00> : vector<8x96xf32>
    %123 = tpu.matmul %100, %1, %cst_45 {dimension_numbers = #tpu.dot_dimension_numbers<[1], [0], [0], [1], [0, 0, 1, 1], [], []>} : vector<8x32xf32>, vector<32x96xf32>, vector<8x96xf32> -> vector<8x96xf32>
    %124 = arith.addf %123, %5 : vector<8x96xf32>
    %125 = vector.extract_strided_slice %122 {offsets = [0, 0], sizes = [8, 64], strides = [1, 1]} : vector<8x96xf32> to vector<8x64xf32>
    %126 = vector.extract_strided_slice %124 {offsets = [0, 0], sizes = [8, 64], strides = [1, 1]} : vector<8x96xf32> to vector<8x64xf32>
    %127 = arith.addf %125, %126 : vector<8x64xf32>
    %128 = arith.negf %127 : vector<8x64xf32>
    %129 = math.exp %128 : vector<8x64xf32>
    %cst_46 = arith.constant 1.000000e+00 : f32
    %130 = vector.broadcast %cst_46 : f32 to vector<8x64xf32>
    %131 = arith.addf %130, %129 : vector<8x64xf32>
    %132 = arith.divf %130, %131 : vector<8x64xf32>
    %133 = vector.extract_strided_slice %132 {offsets = [0, 0], sizes = [8, 32], strides = [1, 1]} : vector<8x64xf32> to vector<8x32xf32>
    %134 = vector.extract_strided_slice %132 {offsets = [0, 32], sizes = [8, 32], strides = [1, 1]} : vector<8x64xf32> to vector<8x32xf32>
    %135 = vector.extract_strided_slice %122 {offsets = [0, 64], sizes = [8, 32], strides = [1, 1]} : vector<8x96xf32> to vector<8x32xf32>
    %136 = vector.extract_strided_slice %124 {offsets = [0, 64], sizes = [8, 32], strides = [1, 1]} : vector<8x96xf32> to vector<8x32xf32>
    %137 = arith.mulf %133, %136 : vector<8x32xf32>
    %138 = arith.addf %135, %137 : vector<8x32xf32>
    %139 = math.tanh %138 : vector<8x32xf32>
    %cst_47 = arith.constant 1.000000e+00 : f32
    %140 = vector.broadcast %cst_47 : f32 to vector<8x32xf32>
    %141 = arith.subf %140, %134 : vector<8x32xf32>
    %142 = arith.mulf %141, %139 : vector<8x32xf32>
    %143 = arith.mulf %134, %100 : vector<8x32xf32>
    %144 = arith.addf %142, %143 : vector<8x32xf32>
    %145 = tpu.concatenate %144, %121 in 1 : vector<8x32xf32>, vector<8x32xf32> -> vector<8x64xf32>
    %cst_48 = arith.constant dense<0.000000e+00> : vector<8x128xf32>
    %146 = tpu.matmul %145, %7, %cst_48 {dimension_numbers = #tpu.dot_dimension_numbers<[1], [0], [0], [1], [0, 0, 1, 1], [], []>} : vector<8x64xf32>, vector<64x128xf32>, vector<8x128xf32> -> vector<8x128xf32>
    %147 = arith.addf %146, %14 : vector<8x128xf32>
    %148 = vector.extract_strided_slice %147 {offsets = [0, 0], sizes = [8, 64], strides = [1, 1]} : vector<8x128xf32> to vector<8x64xf32>
    %149 = arith.negf %148 : vector<8x64xf32>
    %150 = math.exp %149 : vector<8x64xf32>
    %cst_49 = arith.constant 1.000000e+00 : f32
    %151 = vector.broadcast %cst_49 : f32 to vector<8x64xf32>
    %152 = arith.addf %151, %150 : vector<8x64xf32>
    %153 = arith.divf %151, %152 : vector<8x64xf32>
    %154 = vector.extract_strided_slice %153 {offsets = [0, 0], sizes = [8, 32], strides = [1, 1]} : vector<8x64xf32> to vector<8x32xf32>
    %155 = vector.extract_strided_slice %153 {offsets = [0, 32], sizes = [8, 32], strides = [1, 1]} : vector<8x64xf32> to vector<8x32xf32>
    %156 = vector.extract_strided_slice %147 {offsets = [0, 64], sizes = [8, 32], strides = [1, 1]} : vector<8x128xf32> to vector<8x32xf32>
    %157 = vector.extract_strided_slice %147 {offsets = [0, 96], sizes = [8, 32], strides = [1, 1]} : vector<8x128xf32> to vector<8x32xf32>
    %158 = arith.mulf %154, %157 : vector<8x32xf32>
    %159 = arith.addf %156, %158 : vector<8x32xf32>
    %160 = math.tanh %159 : vector<8x32xf32>
    %cst_50 = arith.constant 1.000000e+00 : f32
    %161 = vector.broadcast %cst_50 : f32 to vector<8x32xf32>
    %162 = arith.subf %161, %155 : vector<8x32xf32>
    %163 = arith.mulf %162, %160 : vector<8x32xf32>
    %164 = arith.mulf %155, %121 : vector<8x32xf32>
    %165 = arith.addf %163, %164 : vector<8x32xf32>
    %166 = vector.extract_strided_slice %31 {offsets = [24, 0], sizes = [8, 96], strides = [1, 1]} : vector<64x96xf32> to vector<8x96xf32>
    %cst_51 = arith.constant dense<0.000000e+00> : vector<8x96xf32>
    %167 = tpu.matmul %144, %1, %cst_51 {dimension_numbers = #tpu.dot_dimension_numbers<[1], [0], [0], [1], [0, 0, 1, 1], [], []>} : vector<8x32xf32>, vector<32x96xf32>, vector<8x96xf32> -> vector<8x96xf32>
    %168 = arith.addf %167, %5 : vector<8x96xf32>
    %169 = vector.extract_strided_slice %166 {offsets = [0, 0], sizes = [8, 64], strides = [1, 1]} : vector<8x96xf32> to vector<8x64xf32>
    %170 = vector.extract_strided_slice %168 {offsets = [0, 0], sizes = [8, 64], strides = [1, 1]} : vector<8x96xf32> to vector<8x64xf32>
    %171 = arith.addf %169, %170 : vector<8x64xf32>
    %172 = arith.negf %171 : vector<8x64xf32>
    %173 = math.exp %172 : vector<8x64xf32>
    %cst_52 = arith.constant 1.000000e+00 : f32
    %174 = vector.broadcast %cst_52 : f32 to vector<8x64xf32>
    %175 = arith.addf %174, %173 : vector<8x64xf32>
    %176 = arith.divf %174, %175 : vector<8x64xf32>
    %177 = vector.extract_strided_slice %176 {offsets = [0, 0], sizes = [8, 32], strides = [1, 1]} : vector<8x64xf32> to vector<8x32xf32>
    %178 = vector.extract_strided_slice %176 {offsets = [0, 32], sizes = [8, 32], strides = [1, 1]} : vector<8x64xf32> to vector<8x32xf32>
    %179 = vector.extract_strided_slice %166 {offsets = [0, 64], sizes = [8, 32], strides = [1, 1]} : vector<8x96xf32> to vector<8x32xf32>
    %180 = vector.extract_strided_slice %168 {offsets = [0, 64], sizes = [8, 32], strides = [1, 1]} : vector<8x96xf32> to vector<8x32xf32>
    %181 = arith.mulf %177, %180 : vector<8x32xf32>
    %182 = arith.addf %179, %181 : vector<8x32xf32>
    %183 = math.tanh %182 : vector<8x32xf32>
    %cst_53 = arith.constant 1.000000e+00 : f32
    %184 = vector.broadcast %cst_53 : f32 to vector<8x32xf32>
    %185 = arith.subf %184, %178 : vector<8x32xf32>
    %186 = arith.mulf %185, %183 : vector<8x32xf32>
    %187 = arith.mulf %178, %144 : vector<8x32xf32>
    %188 = arith.addf %186, %187 : vector<8x32xf32>
    %189 = tpu.concatenate %188, %165 in 1 : vector<8x32xf32>, vector<8x32xf32> -> vector<8x64xf32>
    %cst_54 = arith.constant dense<0.000000e+00> : vector<8x128xf32>
    %190 = tpu.matmul %189, %7, %cst_54 {dimension_numbers = #tpu.dot_dimension_numbers<[1], [0], [0], [1], [0, 0, 1, 1], [], []>} : vector<8x64xf32>, vector<64x128xf32>, vector<8x128xf32> -> vector<8x128xf32>
    %191 = arith.addf %190, %14 : vector<8x128xf32>
    %192 = vector.extract_strided_slice %191 {offsets = [0, 0], sizes = [8, 64], strides = [1, 1]} : vector<8x128xf32> to vector<8x64xf32>
    %193 = arith.negf %192 : vector<8x64xf32>
    %194 = math.exp %193 : vector<8x64xf32>
    %cst_55 = arith.constant 1.000000e+00 : f32
    %195 = vector.broadcast %cst_55 : f32 to vector<8x64xf32>
    %196 = arith.addf %195, %194 : vector<8x64xf32>
    %197 = arith.divf %195, %196 : vector<8x64xf32>
    %198 = vector.extract_strided_slice %197 {offsets = [0, 0], sizes = [8, 32], strides = [1, 1]} : vector<8x64xf32> to vector<8x32xf32>
    %199 = vector.extract_strided_slice %197 {offsets = [0, 32], sizes = [8, 32], strides = [1, 1]} : vector<8x64xf32> to vector<8x32xf32>
    %200 = vector.extract_strided_slice %191 {offsets = [0, 64], sizes = [8, 32], strides = [1, 1]} : vector<8x128xf32> to vector<8x32xf32>
    %201 = vector.extract_strided_slice %191 {offsets = [0, 96], sizes = [8, 32], strides = [1, 1]} : vector<8x128xf32> to vector<8x32xf32>
    %202 = arith.mulf %198, %201 : vector<8x32xf32>
    %203 = arith.addf %200, %202 : vector<8x32xf32>
    %204 = math.tanh %203 : vector<8x32xf32>
    %cst_56 = arith.constant 1.000000e+00 : f32
    %205 = vector.broadcast %cst_56 : f32 to vector<8x32xf32>
    %206 = arith.subf %205, %199 : vector<8x32xf32>
    %207 = arith.mulf %206, %204 : vector<8x32xf32>
    %208 = arith.mulf %199, %165 : vector<8x32xf32>
    %209 = arith.addf %207, %208 : vector<8x32xf32>
    %210 = vector.extract_strided_slice %31 {offsets = [32, 0], sizes = [8, 96], strides = [1, 1]} : vector<64x96xf32> to vector<8x96xf32>
    %cst_57 = arith.constant dense<0.000000e+00> : vector<8x96xf32>
    %211 = tpu.matmul %188, %1, %cst_57 {dimension_numbers = #tpu.dot_dimension_numbers<[1], [0], [0], [1], [0, 0, 1, 1], [], []>} : vector<8x32xf32>, vector<32x96xf32>, vector<8x96xf32> -> vector<8x96xf32>
    %212 = arith.addf %211, %5 : vector<8x96xf32>
    %213 = vector.extract_strided_slice %210 {offsets = [0, 0], sizes = [8, 64], strides = [1, 1]} : vector<8x96xf32> to vector<8x64xf32>
    %214 = vector.extract_strided_slice %212 {offsets = [0, 0], sizes = [8, 64], strides = [1, 1]} : vector<8x96xf32> to vector<8x64xf32>
    %215 = arith.addf %213, %214 : vector<8x64xf32>
    %216 = arith.negf %215 : vector<8x64xf32>
    %217 = math.exp %216 : vector<8x64xf32>
    %cst_58 = arith.constant 1.000000e+00 : f32
    %218 = vector.broadcast %cst_58 : f32 to vector<8x64xf32>
    %219 = arith.addf %218, %217 : vector<8x64xf32>
    %220 = arith.divf %218, %219 : vector<8x64xf32>
    %221 = vector.extract_strided_slice %220 {offsets = [0, 0], sizes = [8, 32], strides = [1, 1]} : vector<8x64xf32> to vector<8x32xf32>
    %222 = vector.extract_strided_slice %220 {offsets = [0, 32], sizes = [8, 32], strides = [1, 1]} : vector<8x64xf32> to vector<8x32xf32>
    %223 = vector.extract_strided_slice %210 {offsets = [0, 64], sizes = [8, 32], strides = [1, 1]} : vector<8x96xf32> to vector<8x32xf32>
    %224 = vector.extract_strided_slice %212 {offsets = [0, 64], sizes = [8, 32], strides = [1, 1]} : vector<8x96xf32> to vector<8x32xf32>
    %225 = arith.mulf %221, %224 : vector<8x32xf32>
    %226 = arith.addf %223, %225 : vector<8x32xf32>
    %227 = math.tanh %226 : vector<8x32xf32>
    %cst_59 = arith.constant 1.000000e+00 : f32
    %228 = vector.broadcast %cst_59 : f32 to vector<8x32xf32>
    %229 = arith.subf %228, %222 : vector<8x32xf32>
    %230 = arith.mulf %229, %227 : vector<8x32xf32>
    %231 = arith.mulf %222, %188 : vector<8x32xf32>
    %232 = arith.addf %230, %231 : vector<8x32xf32>
    %233 = tpu.concatenate %232, %209 in 1 : vector<8x32xf32>, vector<8x32xf32> -> vector<8x64xf32>
    %cst_60 = arith.constant dense<0.000000e+00> : vector<8x128xf32>
    %234 = tpu.matmul %233, %7, %cst_60 {dimension_numbers = #tpu.dot_dimension_numbers<[1], [0], [0], [1], [0, 0, 1, 1], [], []>} : vector<8x64xf32>, vector<64x128xf32>, vector<8x128xf32> -> vector<8x128xf32>
    %235 = arith.addf %234, %14 : vector<8x128xf32>
    %236 = vector.extract_strided_slice %235 {offsets = [0, 0], sizes = [8, 64], strides = [1, 1]} : vector<8x128xf32> to vector<8x64xf32>
    %237 = arith.negf %236 : vector<8x64xf32>
    %238 = math.exp %237 : vector<8x64xf32>
    %cst_61 = arith.constant 1.000000e+00 : f32
    %239 = vector.broadcast %cst_61 : f32 to vector<8x64xf32>
    %240 = arith.addf %239, %238 : vector<8x64xf32>
    %241 = arith.divf %239, %240 : vector<8x64xf32>
    %242 = vector.extract_strided_slice %241 {offsets = [0, 0], sizes = [8, 32], strides = [1, 1]} : vector<8x64xf32> to vector<8x32xf32>
    %243 = vector.extract_strided_slice %241 {offsets = [0, 32], sizes = [8, 32], strides = [1, 1]} : vector<8x64xf32> to vector<8x32xf32>
    %244 = vector.extract_strided_slice %235 {offsets = [0, 64], sizes = [8, 32], strides = [1, 1]} : vector<8x128xf32> to vector<8x32xf32>
    %245 = vector.extract_strided_slice %235 {offsets = [0, 96], sizes = [8, 32], strides = [1, 1]} : vector<8x128xf32> to vector<8x32xf32>
    %246 = arith.mulf %242, %245 : vector<8x32xf32>
    %247 = arith.addf %244, %246 : vector<8x32xf32>
    %248 = math.tanh %247 : vector<8x32xf32>
    %cst_62 = arith.constant 1.000000e+00 : f32
    %249 = vector.broadcast %cst_62 : f32 to vector<8x32xf32>
    %250 = arith.subf %249, %243 : vector<8x32xf32>
    %251 = arith.mulf %250, %248 : vector<8x32xf32>
    %252 = arith.mulf %243, %209 : vector<8x32xf32>
    %253 = arith.addf %251, %252 : vector<8x32xf32>
    %254 = vector.extract_strided_slice %31 {offsets = [40, 0], sizes = [8, 96], strides = [1, 1]} : vector<64x96xf32> to vector<8x96xf32>
    %cst_63 = arith.constant dense<0.000000e+00> : vector<8x96xf32>
    %255 = tpu.matmul %232, %1, %cst_63 {dimension_numbers = #tpu.dot_dimension_numbers<[1], [0], [0], [1], [0, 0, 1, 1], [], []>} : vector<8x32xf32>, vector<32x96xf32>, vector<8x96xf32> -> vector<8x96xf32>
    %256 = arith.addf %255, %5 : vector<8x96xf32>
    %257 = vector.extract_strided_slice %254 {offsets = [0, 0], sizes = [8, 64], strides = [1, 1]} : vector<8x96xf32> to vector<8x64xf32>
    %258 = vector.extract_strided_slice %256 {offsets = [0, 0], sizes = [8, 64], strides = [1, 1]} : vector<8x96xf32> to vector<8x64xf32>
    %259 = arith.addf %257, %258 : vector<8x64xf32>
    %260 = arith.negf %259 : vector<8x64xf32>
    %261 = math.exp %260 : vector<8x64xf32>
    %cst_64 = arith.constant 1.000000e+00 : f32
    %262 = vector.broadcast %cst_64 : f32 to vector<8x64xf32>
    %263 = arith.addf %262, %261 : vector<8x64xf32>
    %264 = arith.divf %262, %263 : vector<8x64xf32>
    %265 = vector.extract_strided_slice %264 {offsets = [0, 0], sizes = [8, 32], strides = [1, 1]} : vector<8x64xf32> to vector<8x32xf32>
    %266 = vector.extract_strided_slice %264 {offsets = [0, 32], sizes = [8, 32], strides = [1, 1]} : vector<8x64xf32> to vector<8x32xf32>
    %267 = vector.extract_strided_slice %254 {offsets = [0, 64], sizes = [8, 32], strides = [1, 1]} : vector<8x96xf32> to vector<8x32xf32>
    %268 = vector.extract_strided_slice %256 {offsets = [0, 64], sizes = [8, 32], strides = [1, 1]} : vector<8x96xf32> to vector<8x32xf32>
    %269 = arith.mulf %265, %268 : vector<8x32xf32>
    %270 = arith.addf %267, %269 : vector<8x32xf32>
    %271 = math.tanh %270 : vector<8x32xf32>
    %cst_65 = arith.constant 1.000000e+00 : f32
    %272 = vector.broadcast %cst_65 : f32 to vector<8x32xf32>
    %273 = arith.subf %272, %266 : vector<8x32xf32>
    %274 = arith.mulf %273, %271 : vector<8x32xf32>
    %275 = arith.mulf %266, %232 : vector<8x32xf32>
    %276 = arith.addf %274, %275 : vector<8x32xf32>
    %277 = tpu.concatenate %276, %253 in 1 : vector<8x32xf32>, vector<8x32xf32> -> vector<8x64xf32>
    %cst_66 = arith.constant dense<0.000000e+00> : vector<8x128xf32>
    %278 = tpu.matmul %277, %7, %cst_66 {dimension_numbers = #tpu.dot_dimension_numbers<[1], [0], [0], [1], [0, 0, 1, 1], [], []>} : vector<8x64xf32>, vector<64x128xf32>, vector<8x128xf32> -> vector<8x128xf32>
    %279 = arith.addf %278, %14 : vector<8x128xf32>
    %280 = vector.extract_strided_slice %279 {offsets = [0, 0], sizes = [8, 64], strides = [1, 1]} : vector<8x128xf32> to vector<8x64xf32>
    %281 = arith.negf %280 : vector<8x64xf32>
    %282 = math.exp %281 : vector<8x64xf32>
    %cst_67 = arith.constant 1.000000e+00 : f32
    %283 = vector.broadcast %cst_67 : f32 to vector<8x64xf32>
    %284 = arith.addf %283, %282 : vector<8x64xf32>
    %285 = arith.divf %283, %284 : vector<8x64xf32>
    %286 = vector.extract_strided_slice %285 {offsets = [0, 0], sizes = [8, 32], strides = [1, 1]} : vector<8x64xf32> to vector<8x32xf32>
    %287 = vector.extract_strided_slice %285 {offsets = [0, 32], sizes = [8, 32], strides = [1, 1]} : vector<8x64xf32> to vector<8x32xf32>
    %288 = vector.extract_strided_slice %279 {offsets = [0, 64], sizes = [8, 32], strides = [1, 1]} : vector<8x128xf32> to vector<8x32xf32>
    %289 = vector.extract_strided_slice %279 {offsets = [0, 96], sizes = [8, 32], strides = [1, 1]} : vector<8x128xf32> to vector<8x32xf32>
    %290 = arith.mulf %286, %289 : vector<8x32xf32>
    %291 = arith.addf %288, %290 : vector<8x32xf32>
    %292 = math.tanh %291 : vector<8x32xf32>
    %cst_68 = arith.constant 1.000000e+00 : f32
    %293 = vector.broadcast %cst_68 : f32 to vector<8x32xf32>
    %294 = arith.subf %293, %287 : vector<8x32xf32>
    %295 = arith.mulf %294, %292 : vector<8x32xf32>
    %296 = arith.mulf %287, %253 : vector<8x32xf32>
    %297 = arith.addf %295, %296 : vector<8x32xf32>
    %298 = vector.extract_strided_slice %31 {offsets = [48, 0], sizes = [8, 96], strides = [1, 1]} : vector<64x96xf32> to vector<8x96xf32>
    %cst_69 = arith.constant dense<0.000000e+00> : vector<8x96xf32>
    %299 = tpu.matmul %276, %1, %cst_69 {dimension_numbers = #tpu.dot_dimension_numbers<[1], [0], [0], [1], [0, 0, 1, 1], [], []>} : vector<8x32xf32>, vector<32x96xf32>, vector<8x96xf32> -> vector<8x96xf32>
    %300 = arith.addf %299, %5 : vector<8x96xf32>
    %301 = vector.extract_strided_slice %298 {offsets = [0, 0], sizes = [8, 64], strides = [1, 1]} : vector<8x96xf32> to vector<8x64xf32>
    %302 = vector.extract_strided_slice %300 {offsets = [0, 0], sizes = [8, 64], strides = [1, 1]} : vector<8x96xf32> to vector<8x64xf32>
    %303 = arith.addf %301, %302 : vector<8x64xf32>
    %304 = arith.negf %303 : vector<8x64xf32>
    %305 = math.exp %304 : vector<8x64xf32>
    %cst_70 = arith.constant 1.000000e+00 : f32
    %306 = vector.broadcast %cst_70 : f32 to vector<8x64xf32>
    %307 = arith.addf %306, %305 : vector<8x64xf32>
    %308 = arith.divf %306, %307 : vector<8x64xf32>
    %309 = vector.extract_strided_slice %308 {offsets = [0, 0], sizes = [8, 32], strides = [1, 1]} : vector<8x64xf32> to vector<8x32xf32>
    %310 = vector.extract_strided_slice %308 {offsets = [0, 32], sizes = [8, 32], strides = [1, 1]} : vector<8x64xf32> to vector<8x32xf32>
    %311 = vector.extract_strided_slice %298 {offsets = [0, 64], sizes = [8, 32], strides = [1, 1]} : vector<8x96xf32> to vector<8x32xf32>
    %312 = vector.extract_strided_slice %300 {offsets = [0, 64], sizes = [8, 32], strides = [1, 1]} : vector<8x96xf32> to vector<8x32xf32>
    %313 = arith.mulf %309, %312 : vector<8x32xf32>
    %314 = arith.addf %311, %313 : vector<8x32xf32>
    %315 = math.tanh %314 : vector<8x32xf32>
    %cst_71 = arith.constant 1.000000e+00 : f32
    %316 = vector.broadcast %cst_71 : f32 to vector<8x32xf32>
    %317 = arith.subf %316, %310 : vector<8x32xf32>
    %318 = arith.mulf %317, %315 : vector<8x32xf32>
    %319 = arith.mulf %310, %276 : vector<8x32xf32>
    %320 = arith.addf %318, %319 : vector<8x32xf32>
    %321 = tpu.concatenate %320, %297 in 1 : vector<8x32xf32>, vector<8x32xf32> -> vector<8x64xf32>
    %cst_72 = arith.constant dense<0.000000e+00> : vector<8x128xf32>
    %322 = tpu.matmul %321, %7, %cst_72 {dimension_numbers = #tpu.dot_dimension_numbers<[1], [0], [0], [1], [0, 0, 1, 1], [], []>} : vector<8x64xf32>, vector<64x128xf32>, vector<8x128xf32> -> vector<8x128xf32>
    %323 = arith.addf %322, %14 : vector<8x128xf32>
    %324 = vector.extract_strided_slice %323 {offsets = [0, 0], sizes = [8, 64], strides = [1, 1]} : vector<8x128xf32> to vector<8x64xf32>
    %325 = arith.negf %324 : vector<8x64xf32>
    %326 = math.exp %325 : vector<8x64xf32>
    %cst_73 = arith.constant 1.000000e+00 : f32
    %327 = vector.broadcast %cst_73 : f32 to vector<8x64xf32>
    %328 = arith.addf %327, %326 : vector<8x64xf32>
    %329 = arith.divf %327, %328 : vector<8x64xf32>
    %330 = vector.extract_strided_slice %329 {offsets = [0, 0], sizes = [8, 32], strides = [1, 1]} : vector<8x64xf32> to vector<8x32xf32>
    %331 = vector.extract_strided_slice %329 {offsets = [0, 32], sizes = [8, 32], strides = [1, 1]} : vector<8x64xf32> to vector<8x32xf32>
    %332 = vector.extract_strided_slice %323 {offsets = [0, 64], sizes = [8, 32], strides = [1, 1]} : vector<8x128xf32> to vector<8x32xf32>
    %333 = vector.extract_strided_slice %323 {offsets = [0, 96], sizes = [8, 32], strides = [1, 1]} : vector<8x128xf32> to vector<8x32xf32>
    %334 = arith.mulf %330, %333 : vector<8x32xf32>
    %335 = arith.addf %332, %334 : vector<8x32xf32>
    %336 = math.tanh %335 : vector<8x32xf32>
    %cst_74 = arith.constant 1.000000e+00 : f32
    %337 = vector.broadcast %cst_74 : f32 to vector<8x32xf32>
    %338 = arith.subf %337, %331 : vector<8x32xf32>
    %339 = arith.mulf %338, %336 : vector<8x32xf32>
    %340 = arith.mulf %331, %297 : vector<8x32xf32>
    %341 = arith.addf %339, %340 : vector<8x32xf32>
    %342 = vector.extract_strided_slice %31 {offsets = [56, 0], sizes = [8, 96], strides = [1, 1]} : vector<64x96xf32> to vector<8x96xf32>
    %cst_75 = arith.constant dense<0.000000e+00> : vector<8x96xf32>
    %343 = tpu.matmul %320, %1, %cst_75 {dimension_numbers = #tpu.dot_dimension_numbers<[1], [0], [0], [1], [0, 0, 1, 1], [], []>} : vector<8x32xf32>, vector<32x96xf32>, vector<8x96xf32> -> vector<8x96xf32>
    %344 = arith.addf %343, %5 : vector<8x96xf32>
    %345 = vector.extract_strided_slice %342 {offsets = [0, 0], sizes = [8, 64], strides = [1, 1]} : vector<8x96xf32> to vector<8x64xf32>
    %346 = vector.extract_strided_slice %344 {offsets = [0, 0], sizes = [8, 64], strides = [1, 1]} : vector<8x96xf32> to vector<8x64xf32>
    %347 = arith.addf %345, %346 : vector<8x64xf32>
    %348 = arith.negf %347 : vector<8x64xf32>
    %349 = math.exp %348 : vector<8x64xf32>
    %cst_76 = arith.constant 1.000000e+00 : f32
    %350 = vector.broadcast %cst_76 : f32 to vector<8x64xf32>
    %351 = arith.addf %350, %349 : vector<8x64xf32>
    %352 = arith.divf %350, %351 : vector<8x64xf32>
    %353 = vector.extract_strided_slice %352 {offsets = [0, 0], sizes = [8, 32], strides = [1, 1]} : vector<8x64xf32> to vector<8x32xf32>
    %354 = vector.extract_strided_slice %352 {offsets = [0, 32], sizes = [8, 32], strides = [1, 1]} : vector<8x64xf32> to vector<8x32xf32>
    %355 = vector.extract_strided_slice %342 {offsets = [0, 64], sizes = [8, 32], strides = [1, 1]} : vector<8x96xf32> to vector<8x32xf32>
    %356 = vector.extract_strided_slice %344 {offsets = [0, 64], sizes = [8, 32], strides = [1, 1]} : vector<8x96xf32> to vector<8x32xf32>
    %357 = arith.mulf %353, %356 : vector<8x32xf32>
    %358 = arith.addf %355, %357 : vector<8x32xf32>
    %359 = math.tanh %358 : vector<8x32xf32>
    %cst_77 = arith.constant 1.000000e+00 : f32
    %360 = vector.broadcast %cst_77 : f32 to vector<8x32xf32>
    %361 = arith.subf %360, %354 : vector<8x32xf32>
    %362 = arith.mulf %361, %359 : vector<8x32xf32>
    %363 = arith.mulf %354, %320 : vector<8x32xf32>
    %364 = arith.addf %362, %363 : vector<8x32xf32>
    %365 = tpu.concatenate %364, %341 in 1 : vector<8x32xf32>, vector<8x32xf32> -> vector<8x64xf32>
    %cst_78 = arith.constant dense<0.000000e+00> : vector<8x128xf32>
    %366 = tpu.matmul %365, %7, %cst_78 {dimension_numbers = #tpu.dot_dimension_numbers<[1], [0], [0], [1], [0, 0, 1, 1], [], []>} : vector<8x64xf32>, vector<64x128xf32>, vector<8x128xf32> -> vector<8x128xf32>
    %367 = arith.addf %366, %14 : vector<8x128xf32>
    %368 = vector.extract_strided_slice %367 {offsets = [0, 0], sizes = [8, 64], strides = [1, 1]} : vector<8x128xf32> to vector<8x64xf32>
    %369 = arith.negf %368 : vector<8x64xf32>
    %370 = math.exp %369 : vector<8x64xf32>
    %cst_79 = arith.constant 1.000000e+00 : f32
    %371 = vector.broadcast %cst_79 : f32 to vector<8x64xf32>
    %372 = arith.addf %371, %370 : vector<8x64xf32>
    %373 = arith.divf %371, %372 : vector<8x64xf32>
    %374 = vector.extract_strided_slice %373 {offsets = [0, 0], sizes = [8, 32], strides = [1, 1]} : vector<8x64xf32> to vector<8x32xf32>
    %375 = vector.extract_strided_slice %373 {offsets = [0, 32], sizes = [8, 32], strides = [1, 1]} : vector<8x64xf32> to vector<8x32xf32>
    %376 = vector.extract_strided_slice %367 {offsets = [0, 64], sizes = [8, 32], strides = [1, 1]} : vector<8x128xf32> to vector<8x32xf32>
    %377 = vector.extract_strided_slice %367 {offsets = [0, 96], sizes = [8, 32], strides = [1, 1]} : vector<8x128xf32> to vector<8x32xf32>
    %378 = arith.mulf %374, %377 : vector<8x32xf32>
    %379 = arith.addf %376, %378 : vector<8x32xf32>
    %380 = math.tanh %379 : vector<8x32xf32>
    %cst_80 = arith.constant 1.000000e+00 : f32
    %381 = vector.broadcast %cst_80 : f32 to vector<8x32xf32>
    %382 = arith.subf %381, %375 : vector<8x32xf32>
    %383 = arith.mulf %382, %380 : vector<8x32xf32>
    %384 = arith.mulf %375, %341 : vector<8x32xf32>
    %385 = arith.addf %383, %384 : vector<8x32xf32>
    %cst_81 = arith.constant dense<0.000000e+00> : vector<8x3xf32>
    %386 = tpu.matmul %385, %21, %cst_81 {dimension_numbers = #tpu.dot_dimension_numbers<[1], [0], [0], [1], [0, 0, 1, 1], [], []>} : vector<8x32xf32>, vector<32x3xf32>, vector<8x3xf32> -> vector<8x3xf32>
    %387 = vector.broadcast %22 : vector<1x3xf32> to vector<8x3xf32>
    %388 = arith.addf %386, %387 : vector<8x3xf32>
    %c0_82 = arith.constant 0 : index
    %c0_83 = arith.constant 0 : index
    %389 = vector.load %arg11[%c0_82, %c0_83] : memref<8x3xf32, #tpu.memory_space<vmem>>, vector<8x3xf32>
    tpu.vector_store %arg11[%c0_82, %c0_83], %388 {strides = array<i32>} : memref<8x3xf32, #tpu.memory_space<vmem>>, vector<8x3xf32>,
    %cst_84 = arith.constant 0.000000e+00 : f32
    %390 = vector.broadcast %cst_84 : f32 to vector<8x32xf32>
    %391 = tpu.concatenate %390, %364 in 1 : vector<8x32xf32>, vector<8x32xf32> -> vector<8x64xf32>
    %cst_85 = arith.constant dense<0.000000e+00> : vector<8x128xf32>
    %392 = tpu.matmul %391, %9, %cst_85 {dimension_numbers = #tpu.dot_dimension_numbers<[1], [0], [0], [1], [0, 0, 1, 1], [], []>} : vector<8x64xf32>, vector<64x128xf32>, vector<8x128xf32> -> vector<8x128xf32>
    %393 = arith.addf %392, %17 : vector<8x128xf32>
    %394 = vector.extract_strided_slice %393 {offsets = [0, 0], sizes = [8, 64], strides = [1, 1]} : vector<8x128xf32> to vector<8x64xf32>
    %395 = arith.negf %394 : vector<8x64xf32>
    %396 = math.exp %395 : vector<8x64xf32>
    %cst_86 = arith.constant 1.000000e+00 : f32
    %397 = vector.broadcast %cst_86 : f32 to vector<8x64xf32>
    %398 = arith.addf %397, %396 : vector<8x64xf32>
    %399 = arith.divf %397, %398 : vector<8x64xf32>
    %400 = vector.extract_strided_slice %399 {offsets = [0, 0], sizes = [8, 32], strides = [1, 1]} : vector<8x64xf32> to vector<8x32xf32>
    %401 = vector.extract_strided_slice %399 {offsets = [0, 32], sizes = [8, 32], strides = [1, 1]} : vector<8x64xf32> to vector<8x32xf32>
    %402 = vector.extract_strided_slice %393 {offsets = [0, 64], sizes = [8, 32], strides = [1, 1]} : vector<8x128xf32> to vector<8x32xf32>
    %403 = vector.extract_strided_slice %393 {offsets = [0, 96], sizes = [8, 32], strides = [1, 1]} : vector<8x128xf32> to vector<8x32xf32>
    %404 = arith.mulf %400, %403 : vector<8x32xf32>
    %405 = arith.addf %402, %404 : vector<8x32xf32>
    %406 = math.tanh %405 : vector<8x32xf32>
    %cst_87 = arith.constant 1.000000e+00 : f32
    %407 = vector.broadcast %cst_87 : f32 to vector<8x32xf32>
    %408 = arith.subf %407, %401 : vector<8x32xf32>
    %409 = arith.mulf %408, %406 : vector<8x32xf32>
    %410 = arith.mulf %401, %364 : vector<8x32xf32>
    %411 = arith.addf %409, %410 : vector<8x32xf32>
    %412 = tpu.concatenate %411, %385 in 1 : vector<8x32xf32>, vector<8x32xf32> -> vector<8x64xf32>
    %cst_88 = arith.constant dense<0.000000e+00> : vector<8x128xf32>
    %413 = tpu.matmul %412, %11, %cst_88 {dimension_numbers = #tpu.dot_dimension_numbers<[1], [0], [0], [1], [0, 0, 1, 1], [], []>} : vector<8x64xf32>, vector<64x128xf32>, vector<8x128xf32> -> vector<8x128xf32>
    %414 = arith.addf %413, %20 : vector<8x128xf32>
    %415 = vector.extract_strided_slice %414 {offsets = [0, 0], sizes = [8, 64], strides = [1, 1]} : vector<8x128xf32> to vector<8x64xf32>
    %416 = arith.negf %415 : vector<8x64xf32>
    %417 = math.exp %416 : vector<8x64xf32>
    %cst_89 = arith.constant 1.000000e+00 : f32
    %418 = vector.broadcast %cst_89 : f32 to vector<8x64xf32>
    %419 = arith.addf %418, %417 : vector<8x64xf32>
    %420 = arith.divf %418, %419 : vector<8x64xf32>
    %421 = vector.extract_strided_slice %420 {offsets = [0, 0], sizes = [8, 32], strides = [1, 1]} : vector<8x64xf32> to vector<8x32xf32>
    %422 = vector.extract_strided_slice %420 {offsets = [0, 32], sizes = [8, 32], strides = [1, 1]} : vector<8x64xf32> to vector<8x32xf32>
    %423 = vector.extract_strided_slice %414 {offsets = [0, 64], sizes = [8, 32], strides = [1, 1]} : vector<8x128xf32> to vector<8x32xf32>
    %424 = vector.extract_strided_slice %414 {offsets = [0, 96], sizes = [8, 32], strides = [1, 1]} : vector<8x128xf32> to vector<8x32xf32>
    %425 = arith.mulf %421, %424 : vector<8x32xf32>
    %426 = arith.addf %423, %425 : vector<8x32xf32>
    %427 = math.tanh %426 : vector<8x32xf32>
    %cst_90 = arith.constant 1.000000e+00 : f32
    %428 = vector.broadcast %cst_90 : f32 to vector<8x32xf32>
    %429 = arith.subf %428, %422 : vector<8x32xf32>
    %430 = arith.mulf %429, %427 : vector<8x32xf32>
    %431 = arith.mulf %422, %385 : vector<8x32xf32>
    %432 = arith.addf %430, %431 : vector<8x32xf32>
    %cst_91 = arith.constant dense<0.000000e+00> : vector<8x16xf32>
    %433 = tpu.matmul %432, %23, %cst_91 {dimension_numbers = #tpu.dot_dimension_numbers<[1], [0], [0], [1], [0, 0, 1, 1], [], []>} : vector<8x32xf32>, vector<32x16xf32>, vector<8x16xf32> -> vector<8x16xf32>
    %434 = arith.addf %433, %26 : vector<8x16xf32>
    %435 = tpu.concatenate %432, %411 in 1 : vector<8x32xf32>, vector<8x32xf32> -> vector<8x64xf32>
    %cst_92 = arith.constant dense<0.000000e+00> : vector<8x128xf32>
    %436 = tpu.matmul %435, %9, %cst_92 {dimension_numbers = #tpu.dot_dimension_numbers<[1], [0], [0], [1], [0, 0, 1, 1], [], []>} : vector<8x64xf32>, vector<64x128xf32>, vector<8x128xf32> -> vector<8x128xf32>
    %437 = arith.addf %436, %17 : vector<8x128xf32>
    %438 = vector.extract_strided_slice %437 {offsets = [0, 0], sizes = [8, 64], strides = [1, 1]} : vector<8x128xf32> to vector<8x64xf32>
    %439 = arith.negf %438 : vector<8x64xf32>
    %440 = math.exp %439 : vector<8x64xf32>
    %cst_93 = arith.constant 1.000000e+00 : f32
    %441 = vector.broadcast %cst_93 : f32 to vector<8x64xf32>
    %442 = arith.addf %441, %440 : vector<8x64xf32>
    %443 = arith.divf %441, %442 : vector<8x64xf32>
    %444 = vector.extract_strided_slice %443 {offsets = [0, 0], sizes = [8, 32], strides = [1, 1]} : vector<8x64xf32> to vector<8x32xf32>
    %445 = vector.extract_strided_slice %443 {offsets = [0, 32], sizes = [8, 32], strides = [1, 1]} : vector<8x64xf32> to vector<8x32xf32>
    %446 = vector.extract_strided_slice %437 {offsets = [0, 64], sizes = [8, 32], strides = [1, 1]} : vector<8x128xf32> to vector<8x32xf32>
    %447 = vector.extract_strided_slice %437 {offsets = [0, 96], sizes = [8, 32], strides = [1, 1]} : vector<8x128xf32> to vector<8x32xf32>
    %448 = arith.mulf %444, %447 : vector<8x32xf32>
    %449 = arith.addf %446, %448 : vector<8x32xf32>
    %450 = math.tanh %449 : vector<8x32xf32>
    %cst_94 = arith.constant 1.000000e+00 : f32
    %451 = vector.broadcast %cst_94 : f32 to vector<8x32xf32>
    %452 = arith.subf %451, %445 : vector<8x32xf32>
    %453 = arith.mulf %452, %450 : vector<8x32xf32>
    %454 = arith.mulf %445, %411 : vector<8x32xf32>
    %455 = arith.addf %453, %454 : vector<8x32xf32>
    %456 = tpu.concatenate %455, %432 in 1 : vector<8x32xf32>, vector<8x32xf32> -> vector<8x64xf32>
    %cst_95 = arith.constant dense<0.000000e+00> : vector<8x128xf32>
    %457 = tpu.matmul %456, %11, %cst_95 {dimension_numbers = #tpu.dot_dimension_numbers<[1], [0], [0], [1], [0, 0, 1, 1], [], []>} : vector<8x64xf32>, vector<64x128xf32>, vector<8x128xf32> -> vector<8x128xf32>
    %458 = arith.addf %457, %20 : vector<8x128xf32>
    %459 = vector.extract_strided_slice %458 {offsets = [0, 0], sizes = [8, 64], strides = [1, 1]} : vector<8x128xf32> to vector<8x64xf32>
    %460 = arith.negf %459 : vector<8x64xf32>
    %461 = math.exp %460 : vector<8x64xf32>
    %cst_96 = arith.constant 1.000000e+00 : f32
    %462 = vector.broadcast %cst_96 : f32 to vector<8x64xf32>
    %463 = arith.addf %462, %461 : vector<8x64xf32>
    %464 = arith.divf %462, %463 : vector<8x64xf32>
    %465 = vector.extract_strided_slice %464 {offsets = [0, 0], sizes = [8, 32], strides = [1, 1]} : vector<8x64xf32> to vector<8x32xf32>
    %466 = vector.extract_strided_slice %464 {offsets = [0, 32], sizes = [8, 32], strides = [1, 1]} : vector<8x64xf32> to vector<8x32xf32>
    %467 = vector.extract_strided_slice %458 {offsets = [0, 64], sizes = [8, 32], strides = [1, 1]} : vector<8x128xf32> to vector<8x32xf32>
    %468 = vector.extract_strided_slice %458 {offsets = [0, 96], sizes = [8, 32], strides = [1, 1]} : vector<8x128xf32> to vector<8x32xf32>
    %469 = arith.mulf %465, %468 : vector<8x32xf32>
    %470 = arith.addf %467, %469 : vector<8x32xf32>
    %471 = math.tanh %470 : vector<8x32xf32>
    %cst_97 = arith.constant 1.000000e+00 : f32
    %472 = vector.broadcast %cst_97 : f32 to vector<8x32xf32>
    %473 = arith.subf %472, %466 : vector<8x32xf32>
    %474 = arith.mulf %473, %471 : vector<8x32xf32>
    %475 = arith.mulf %466, %432 : vector<8x32xf32>
    %476 = arith.addf %474, %475 : vector<8x32xf32>
    %cst_98 = arith.constant dense<0.000000e+00> : vector<8x16xf32>
    %477 = tpu.matmul %476, %23, %cst_98 {dimension_numbers = #tpu.dot_dimension_numbers<[1], [0], [0], [1], [0, 0, 1, 1], [], []>} : vector<8x32xf32>, vector<32x16xf32>, vector<8x16xf32> -> vector<8x16xf32>
    %478 = arith.addf %477, %26 : vector<8x16xf32>
    %479 = tpu.concatenate %434, %478 in 1 : vector<8x16xf32>, vector<8x16xf32> -> vector<8x32xf32>
    %c0_99 = arith.constant 0 : index
    %c0_100 = arith.constant 0 : index
    %480 = vector.load %arg12[%c0_99, %c0_100] : memref<8x32xf32, #tpu.memory_space<vmem>>, vector<8x32xf32>
    tpu.vector_store %arg12[%c0_99, %c0_100], %479 {strides = array<i32>} : memref<8x32xf32, #tpu.memory_space<vmem>>, vector<8x32xf32>,
    return
  }
  func.func @transform_0(%arg0: i32) -> (i32, i32, i32) {
    %c0_i32 = arith.constant 0 : i32
    %c0_i32_0 = arith.constant 0 : i32
    %c0_i32_1 = arith.constant 0 : i32
    return %c0_i32, %arg0, %c0_i32_0 : i32, i32, i32
  }
  func.func @transform_1(%arg0: i32) -> (i32, i32) {
    %c0_i32 = arith.constant 0 : i32
    %c0_i32_0 = arith.constant 0 : i32
    %c0_i32_1 = arith.constant 0 : i32
    return %c0_i32, %c0_i32_0 : i32, i32
  }
  func.func @transform_2(%arg0: i32) -> (i32, i32) {
    %c0_i32 = arith.constant 0 : i32
    %c0_i32_0 = arith.constant 0 : i32
    %c0_i32_1 = arith.constant 0 : i32
    return %c0_i32, %c0_i32_0 : i32, i32
  }
  func.func @transform_3(%arg0: i32) -> (i32, i32) {
    %c0_i32 = arith.constant 0 : i32
    %c0_i32_0 = arith.constant 0 : i32
    %c0_i32_1 = arith.constant 0 : i32
    return %c0_i32, %c0_i32_0 : i32, i32
  }
  func.func @transform_4(%arg0: i32) -> (i32, i32, i32) {
    %c0_i32 = arith.constant 0 : i32
    %c0_i32_0 = arith.constant 0 : i32
    %c0_i32_1 = arith.constant 0 : i32
    %c0_i32_2 = arith.constant 0 : i32
    return %c0_i32, %c0_i32_0, %c0_i32_1 : i32, i32, i32
  }
  func.func @transform_5(%arg0: i32) -> (i32, i32) {
    %c0_i32 = arith.constant 0 : i32
    %c0_i32_0 = arith.constant 0 : i32
    %c0_i32_1 = arith.constant 0 : i32
    return %c0_i32, %c0_i32_0 : i32, i32
  }
  func.func @transform_6(%arg0: i32) -> (i32, i32) {
    %c0_i32 = arith.constant 0 : i32
    %c0_i32_0 = arith.constant 0 : i32
    %c0_i32_1 = arith.constant 0 : i32
    return %c0_i32, %c0_i32_0 : i32, i32
  }
  func.func @transform_7(%arg0: i32) -> (i32, i32) {
    %c0_i32 = arith.constant 0 : i32
    %c0_i32_0 = arith.constant 0 : i32
    %c0_i32_1 = arith.constant 0 : i32
    return %c0_i32, %c0_i32_0 : i32, i32
  }
  func.func @transform_8(%arg0: i32) -> (i32, i32) {
    %c0_i32 = arith.constant 0 : i32
    %c0_i32_0 = arith.constant 0 : i32
    %c0_i32_1 = arith.constant 0 : i32
    return %c0_i32, %c0_i32_0 : i32, i32
  }
  func.func @transform_9(%arg0: i32) -> (i32, i32) {
    %c0_i32 = arith.constant 0 : i32
    %c0_i32_0 = arith.constant 0 : i32
    %c0_i32_1 = arith.constant 0 : i32
    return %c0_i32, %c0_i32_0 : i32, i32
  }
  func.func @transform_10(%arg0: i32) -> (i32, i32) {
    %c0_i32 = arith.constant 0 : i32
    %c0_i32_0 = arith.constant 0 : i32
    return %arg0, %c0_i32 : i32, i32
  }
  func.func @transform_11(%arg0: i32) -> (i32, i32) {
    %c0_i32 = arith.constant 0 : i32
    %c0_i32_0 = arith.constant 0 : i32
    return %arg0, %c0_i32 : i32, i32
  }
}

</mosaic_0001>

<bundles_post_ra>
// kernel: segrnn_forward.1
= control target key start
LH: loop header
LB: loop body
LE: loop exit
PB: predicated region body
PF: predicated region fallthrough
CT: control target
= control target key end

     0   :  { %v3262_v0 = vmov 0.0   ;;  %vm3263_vm0 = vmmov 0   ;;  %vm118_vm1 = vcmask 130048   ;;  %s3264_s15 = smov 64   ;;  %s3265_s21 = smov 96   ;;  %vm248_vm2 = vcmask 261120   ;;  %s4140_s3 = inlined_call_operand.vmem [shape: f32[32,96], index: 3, kind: input, shape index: {}]   ;;  %s4141_s1 = inlined_call_operand.vmem [shape: f32[16,96], index: 1, kind: input, shape index: {}]   ;;  %s4142_s0 = inlined_call_operand.vmem [shape: f32[8,8,16], index: 0, kind: input, shape index: {}]   ;;  %s4143_s2 = inlined_call_operand.vmem [shape: f32[2,96], index: 2, kind: input, shape index: {}]   ;;  %s4144_s4 = inlined_call_operand.vmem [shape: f32[3,64,128], index: 4, kind: input, shape index: {}]   ;;  %s4145_s5 = inlined_call_operand.vmem [shape: f32[3,128], index: 5, kind: input, shape index: {}]   ;;  %s4146_s6 = inlined_call_operand.vmem [shape: f32[32,3], index: 6, kind: input, shape index: {}]   ;;  %s4147_s7 = inlined_call_operand.vmem [shape: f32[1,3], index: 7, kind: input, shape index: {}]   ;;  %s4148_s10 = inlined_call_operand.vmem [shape: f32[8,3], index: 10, kind: output, shape index: {0}]   ;;  %s4149_s8 = inlined_call_operand.vmem [shape: f32[32,16], index: 8, kind: input, shape index: {}]   ;;  %s4150_s9 = inlined_call_operand.vmem [shape: f32[1,16], index: 9, kind: input, shape index: {}]   ;;  %s4151_s11 = inlined_call_operand.vmem [shape: f32[8,32], index: 11, kind: output, shape index: {1}]  }
   0x1   :  { %2773 = vmatprep.subr.mxu1 %v3262_v0  ;;  %v3332_v1 = vld [vmem:[%s4140_s3 + $0x18] sm:$0xff]  ;;  %v38_v2 = vld [vmem:[%s4141_s1 + $0x8] sm:$0xff]  ;;  %v3340_v3 = vld [vmem:[%s4140_s3 + $0x10] sm:$0xff]  ;;  %2781 = vmatprep.mubr.msk.f32.mxu1 %vm3263_vm0, %v3262_v0  ;;  %vm353_vm3 = vcmask 523264   ;;  %s3266_s29 = smov 32   ;;  %vm1940_vm4 = vcmask 23552  }
   0x2   :  { %2774 = vmatpush3.msra.mxu1 %v3332_v1  ;;  %2757 = vmatprep.subr.mxu0 %v38_v2  ;;  %v37_v4 = vld [vmem:[%s4141_s1] sm:$0xff]  ;;  %v3355_v6 = vld [vmem:[%s4140_s3 + $0x8] sm:$0xff]  ;;  %v108_v26 = vld [vmem:[%s4142_s0 + $0x10] sm:$0xff] }
   0x3   :  { %2775 = vmatprep.subr.mxu1 %v3262_v0  ;;  %2758 = vmatpush3.msra.mxu0 %v38_v2  ;;  %v106_v5 = vld [vmem:[%s4142_s0] sm:$0xff]  ;;  %v107_v7 = vld [vmem:[%s4142_s0 + $0x8] sm:$0xff]  ;;  %v109_v27 = vld [vmem:[%s4142_s0 + $0x18] sm:$0xff] }
   0x4   :  { %2776 = vmatpush3.msra.mxu1 %v3340_v3  ;;  %2759 = vmatprep.subr.mxu0 %v37_v4  ;;  %v3365_v8 = vld [vmem:[%s4140_s3] sm:$0xff]  ;;  %v3410_v28 = vld [vmem:[%s4144_s4 + $0x38] sm:$0xff]  ;;  %v3416_v29 = vld [vmem:[%s4144_s4 + $0x30] sm:$0xff] }
   0x5   :  { %2777 = vmatprep.subr.mxu1 %v3262_v0  ;;  %2760 = vmatpush3.msra.mxu0 %v37_v4  ;;  %v3388_v9 = vld [vmem:[%s4143_s2 + $0x1] ss:$0 sm:$0xff]  ;;  %v3397_v14 = vld [vmem:[%s4143_s2] ss:$0 sm:$0xff]  ;;  %v3427_v31 = vld [vmem:[%s4144_s4 + $0x28] sm:$0xff] }
   0x6   :  { %2761 = vmatprep.mubr.msk.f32.mxu0 %vm118_vm1, %v106_v5  ;;  %2778 = vmatpush3.msra.mxu1 %v3355_v6  ;;  %v110_v30 = vld [vmem:[%s4142_s0 + $0x20] sm:$0xff]  ;;  %v111_v32 = vld [vmem:[%s4142_s0 + $0x28] sm:$0xff]  ;;  %v112_v34 = vld [vmem:[%s4142_s0 + $0x30] sm:$0xff] }
   0x7   :  { %2762 = vmatmul.mubr.msk.f32.vlgmr.msra.gmra.mxu0 %vm118_vm1, %v107_v7  ;;  %2779 = vmatprep.subr.mxu1 %v3262_v0  ;;  %v3438_v33 = vld [vmem:[%s4144_s4 + $0x20] sm:$0xff]  ;;  %v3449_v35 = vld [vmem:[%s4144_s4 + $0x18] sm:$0xff]  ;;  %v3461_v38 = vld [vmem:[%s4144_s4 + $0x10] sm:$0xff] }
   0x8   :  { %2780 = vmatpush3.msra.mxu1 %v3365_v8  ;;  %2784 = vmatprep.subr.mxu0 %v3262_v0  ;;  %v113_v37 = vld [vmem:[%s4142_s0 + $0x38] sm:$0xff]  ;;  %v3469_v39 = vld [vmem:[%s4144_s4 + $0x8] sm:$0xff]  ;;  %v3480_v40 = vld [vmem:[%s4144_s4] sm:$0xff] }
   0x9   :  { %2782 = vmatmul.mubr.f32.vlgmr.msra.gmra.mxu1 %v3262_v0  ;;  %2803 = vmatprep.subr.mxu1 %v3262_v0 }
   0xa   :  { %2804 = vmatpush3.msra.mxu1 %v3332_v1  ;;  %2811 = vmatprep.mubr.msk.f32.mxu1 %vm3263_vm0, %v3262_v0 }
   0xb   :  { %2805 = vmatprep.subr.mxu1 %v3262_v0  ;;  %2764 = vmatprep.mubr.msk.f32.mxu0 %vm118_vm1, %v108_v26 }
   0xc   :  { %2806 = vmatpush3.msra.mxu1 %v3340_v3  ;;  %2785 = vmatpush3.msra.mxu0 %v3410_v28 }
   0xd   :  { %2807 = vmatprep.subr.mxu1 %v3262_v0  ;;  %2786 = vmatprep.subr.mxu0 %v3262_v0 }
   0xe   :  { %2808 = vmatpush3.msra.mxu1 %v3355_v6  ;;  %2765 = vmatmul.mubr.msk.f32.gmra.mxu0 %vm118_vm1, %v109_v27 }
   0xf   :  { %2809 = vmatprep.subr.mxu1 %v3262_v0  ;;  %2787 = vmatpush3.msra.mxu0 %v3416_v29 }
  0x10   :  { %2810 = vmatpush3.msra.mxu1 %v3365_v8  ;;  %2767 = vmatprep.mubr.msk.f32.mxu0 %vm118_vm1, %v110_v30 }
  0x11   :  { %2814 = vmatprep.subr.mxu1 %v3262_v0  ;;  %2788 = vmatprep.subr.mxu0 %v3262_v0 }
  0x12   :  { %2789 = vmatpush3.msra.mxu0 %v3427_v31 }
  0x13   :  { %2790 = vmatprep.subr.mxu0 %v3262_v0  ;;  %2768 = vmatmul.mubr.msk.f32.gmra.mxu0 %vm118_vm1, %v111_v32 }
  0x14   :  { %2791 = vmatpush3.msra.mxu0 %v3438_v33  ;;  %2770 = vmatprep.mubr.msk.f32.mxu0 %vm118_vm1, %v112_v34 }
  0x15   :  { %2792 = vmatprep.subr.mxu0 %v3262_v0 }
  0x16   :  { %2793 = vmatpush3.msra.mxu0 %v3449_v35 }
  0x17   :  { %2794 = vmatprep.subr.mxu0 %v3262_v0  ;;  %2771 = vmatmul.mubr.msk.f32.gmra.mxu0 %vm118_vm1, %v113_v37 }
  0x18   :  { %2795 = vmatpush3.msra.mxu0 %v3461_v38  ;;  %2800 = vmatprep.mubr.msk.f32.mxu0 %vm3263_vm0, %v3262_v0 }
  0x19   :  { %2796 = vmatprep.subr.mxu0 %v3262_v0 }
  0x1a   :  { %2797 = vmatpush3.msra.mxu0 %v3469_v39 }
  0x1b   :  { %2798 = vmatprep.subr.mxu0 %v3262_v0 }
  0x1c   :  { %2799 = vmatpush3.msra.mxu0 %v3480_v40 }
  0x1d   :  { %2833 = vmatprep.subr.mxu0 %v3262_v0 }
  0xc7   :  { %v3392_v13 = vpop.f32.mrf.mxu0 }
  0xc8   :  { %v215_v59 = vadd.f32 %v3392_v13, %v3397_v14 }
  0xc9   :  { %v318_v10 = vpop.f32.mrf.mxu1  ;;  %v209_v15 = vpop.f32.mrf.mxu0 }
  0xca   :  { %v319_v11 = vadd.f32 %v3388_v9, %v318_v10  ;;  %v210_v16 = vadd.f32 %v3397_v14, %v209_v15 }
  0xcb   :  { %v2783_v12 = vpop.f32.mrf.mxu1 }
  0xcc   :  { %330 = vrot.lane.b32.xlu0 %v319_v11, %s3264_s15  ;;  %v322_v17 = vadd.f32 %v319_v11, %v210_v16  ;;  %v3539_v12 = vld [vmem:[%s4145_s5] ss:$0 sm:$0xff] }
  0xce   :  { %v2541_v18 = vmul.f32 -1.442695, %v322_v17  ;;  %v3519_v48 = vpop.f32.mrf.mxu0 }
  0xd0   :  { %3128 = vpow2.f32 %v2541_v18  ;;  %v3521_v49 = vpop.f32.mrf.mxu0 }
  0xd3   :  { %v3523_v50 = vpop.f32.mrf.mxu0 }
  0xd5   :  { %v3525_v51 = vpop.f32.mrf.mxu0 }
  0xd7   :  { %v3527_v52 = vpop.f32.mrf.mxu0 }
  0xd9   :  { %v3529_v53 = vpop.f32.mrf.mxu0 }
  0xdd   :  { %v3129_v19 = vpop.eup %3128 }
  0xde   :  { %v326_v20 = vadd.f32 1.0, %v3129_v19 }
  0xe0   :  { %3130 = vrcp.f32 %v326_v20 }
  0xed   :  { %v3131_v21 = vpop.eup %3130 }
  0xee   :  { %v340_v41 = vsub.f32 1.0, %v3131_v21  ;;  %v346_v43 = vmul.f32 0.0, %v3131_v21 }
 0x13e   :  { %v331_v22 = vpop.permute.xlu0 %330 }
 0x13f   :  { %v333_v23 = vmul.f32 %v3131_v21, %v331_v22 }
 0x141   :  { %335 = vrot.lane.b32.xlu0 %v333_v23, %s3264_s15 }
 0x1b3   :  { %v336_v24 = vpop.permute.xlu0 %335 }
 0x1b4   :  { %v338_v25 = vadd.f32 %v336_v24, %v210_v16 }
 0x1b6   :  { %3132 = vtanh.f32 %v338_v25 }
 0x1c3   :  { %v3133_v36 = vpop.eup %3132 }
 0x1c4   :  { %342 = vrot.lane.b32.xlu1 %v3133_v36, %s3265_s21 }
 0x236   :  { %v343_v42 = vpop.permute.xlu1 %342 }
 0x237   :  { %v345_v44 = vmul.f32 %v343_v42, %v340_v41 }
 0x239   :  { %v3484_v45 = vadd.f32 %v346_v43, %v345_v44 }
 0x23b   :  { %349 = vrot.lane.b32.xlu1 %v3484_v45, %s3265_s21 }
 0x2ad   :  { %v350_v46 = vpop.permute.xlu1 %349 }
 0x2ae   :  { %v352_v47 = vsel %vm248_vm2, %v350_v46, 0.0  ;;  %2812 = vmatmul.mubr.msk.f32.vlgmr.msra.gmra.mxu1 %vm248_vm2, %v350_v46 }
 0x2af   :  { %2801 = vmatmul.mubr.msk.f32.vlgmr.msra.gmra.mxu0 %vm353_vm3, %v352_v47  ;;  %2815 = vmatpush3.msra.mxu1 %v3410_v28  ;;  %v220_v47 = vadd.f32 %v3397_v14, %v3521_v49 }
 0x2b0   :  { %2834 = vmatpush3.msra.mxu0 %v3332_v1  ;;  %2841 = vmatprep.mubr.msk.f32.mxu0 %vm3263_vm0, %v3262_v0 }
 0x2b1   :  { %2835 = vmatprep.subr.mxu0 %v3262_v0  ;;  %2816 = vmatprep.subr.mxu1 %v3262_v0 }
 0x2b2   :  { %2836 = vmatpush3.msra.mxu0 %v3340_v3  ;;  %2817 = vmatpush3.msra.mxu1 %v3416_v29 }
 0x2b3   :  { %2837 = vmatprep.subr.mxu0 %v3262_v0  ;;  %2818 = vmatprep.subr.mxu1 %v3262_v0 }
 0x2b4   :  { %2838 = vmatpush3.msra.mxu0 %v3355_v6  ;;  %2819 = vmatpush3.msra.mxu1 %v3427_v31 }
 0x2b5   :  { %2839 = vmatprep.subr.mxu0 %v3262_v0  ;;  %2820 = vmatprep.subr.mxu1 %v3262_v0 }
 0x2b6   :  { %2840 = vmatpush3.msra.mxu0 %v3365_v8  ;;  %2821 = vmatpush3.msra.mxu1 %v3438_v33 }
 0x2b7   :  { %2822 = vmatprep.subr.mxu1 %v3262_v0  ;;  %2830 = vmatprep.mubr.msk.f32.mxu1 %vm3263_vm0, %v3262_v0 }
 0x2b8   :  { %2823 = vmatpush3.msra.mxu1 %v3449_v35  ;;  %2844 = vmatprep.subr.mxu0 %v3262_v0 }
 0x2b9   :  { %2824 = vmatprep.subr.mxu1 %v3262_v0 }
 0x2ba   :  { %2825 = vmatpush3.msra.mxu1 %v3461_v38 }
 0x2bb   :  { %2826 = vmatprep.subr.mxu1 %v3262_v0 }
 0x2bc   :  { %2827 = vmatpush3.msra.mxu1 %v3469_v39 }
 0x2bd   :  { %2828 = vmatprep.subr.mxu1 %v3262_v0 }
 0x2be   :  { %2829 = vmatpush3.msra.mxu1 %v3480_v40 }
 0x2bf   :  { %2863 = vmatprep.subr.mxu1 %v3262_v0 }
 0x36e   :  { %v520_v54 = vpop.f32.mrf.mxu1 }
 0x36f   :  { %v521_v55 = vadd.f32 %v3388_v9, %v520_v54  ;;  %v423_v56 = vpop.f32.mrf.mxu0 }
 0x370   :  { %v2813_v57 = vpop.f32.mrf.mxu1  ;;  %v424_v13 = vadd.f32 %v3539_v12, %v423_v56 }
 0x371   :  { %532 = vrot.lane.b32.xlu0 %v521_v55, %s3264_s15  ;;  %v2802_v58 = vpop.f32.mrf.mxu0  ;;  %v524_v60 = vadd.f32 %v521_v55, %v215_v59 }
 0x372   :  { %v2543_v15 = vmul.f32 -1.442695, %v424_v13 }
 0x373   :  { %v2545_v61 = vmul.f32 -1.442695, %v524_v60 }
 0x375   :  { %3134 = vpow2.f32 %v2545_v61 }
 0x382   :  { %v3135_v62 = vpop.eup %3134 }
 0x383   :  { %v528_v63 = vadd.f32 1.0, %v3135_v62 }
 0x385   :  { %3136 = vrcp.f32 %v528_v63 }
 0x392   :  { %v3137_v2 = vpop.eup %3136 }
 0x393   :  { %v542_v18 = vsub.f32 1.0, %v3137_v2  ;;  %v548_v20 = vmul.f32 %v3137_v2, %v3484_v45 }
 0x3e3   :  { %v533_v4 = vpop.permute.xlu0 %532 }
 0x3e4   :  { %v535_v5 = vmul.f32 %v3137_v2, %v533_v4 }
 0x3e6   :  { %537 = vrot.lane.b32.xlu1 %v535_v5, %s3264_s15 }
 0x458   :  { %v538_v7 = vpop.permute.xlu1 %537 }
 0x459   :  { %v540_v10 = vadd.f32 %v538_v7, %v215_v59 }
 0x45b   :  { %3138 = vtanh.f32 %v540_v10 }
 0x45c   :  { %3140 = vpow2.f32 %v2543_v15 }
 0x468   :  { %v3139_v11 = vpop.eup %3138 }
 0x469   :  { %544 = vrot.lane.b32.xlu0 %v3139_v11, %s3265_s21  ;;  %v3141_v16 = vpop.eup %3140 }
 0x46a   :  { %v430_v17 = vadd.f32 1.0, %v3141_v16 }
 0x46c   :  { %3142 = vrcp.f32 %v430_v17 }
 0x46d   :  { %434 = vrot.lane.b32.xlu0 %v424_v13, %s3266_s29 }
 0x479   :  { %v3143_v23 = vpop.eup %3142 }
 0x47a   :  { %v444_v34 = vsub.f32 1.0, %v3143_v23  ;;  %v450_v37 = vmul.f32 0.0, %v3143_v23 }
 0x4db   :  { %v545_v19 = vpop.permute.xlu0 %544 }
 0x4dc   :  { %v547_v21 = vmul.f32 %v545_v19, %v542_v18 }
 0x4de   :  { %v3545_v22 = vadd.f32 %v548_v20, %v547_v21 }
 0x4df   :  { %v435_v24 = vpop.permute.xlu0 %434 }
 0x4e0   :  { %v437_v25 = vmul.f32 %v3143_v23, %v435_v24  ;;  %551 = vrot.lane.b32.xlu1 %v3545_v22, %s3265_s21 }
 0x4e2   :  { %439 = vrot.lane.b32.xlu0 %v437_v25, %s3264_s15 }
 0x552   :  { %v552_v26 = vpop.permute.xlu1 %551 }
 0x553   :  { %2842 = vmatmul.mubr.msk.f32.vlgmr.msra.gmra.mxu0 %vm248_vm2, %v552_v26 }
 0x554   :  { %v440_v27 = vpop.permute.xlu0 %439  ;;  %2845 = vmatpush3.msra.mxu0 %v3410_v28  ;;  %2860 = vmatprep.mubr.msk.f32.mxu0 %vm3263_vm0, %v3262_v0 }
 0x555   :  { %v442_v30 = vadd.f32 %v440_v27, %v424_v13  ;;  %2846 = vmatprep.subr.mxu0 %v3262_v0 }
 0x556   :  { %2847 = vmatpush3.msra.mxu0 %v3416_v29 }
 0x557   :  { %3144 = vtanh.f32 %v442_v30  ;;  %2848 = vmatprep.subr.mxu0 %v3262_v0 }
 0x558   :  { %2849 = vmatpush3.msra.mxu0 %v3427_v31 }
 0x559   :  { %2850 = vmatprep.subr.mxu0 %v3262_v0 }
 0x55a   :  { %2851 = vmatpush3.msra.mxu0 %v3438_v33 }
 0x55b   :  { %2852 = vmatprep.subr.mxu0 %v3262_v0 }
 0x55c   :  { %2853 = vmatpush3.msra.mxu0 %v3449_v35 }
 0x55d   :  { %2854 = vmatprep.subr.mxu0 %v3262_v0 }
 0x55e   :  { %2855 = vmatpush3.msra.mxu0 %v3461_v38 }
 0x55f   :  { %2856 = vmatprep.subr.mxu0 %v3262_v0 }
 0x560   :  { %2857 = vmatpush3.msra.mxu0 %v3469_v39 }
 0x561   :  { %2858 = vmatprep.subr.mxu0 %v3262_v0 }
 0x562   :  { %2859 = vmatpush3.msra.mxu0 %v3480_v40 }
 0x563   :  { %2893 = vmatprep.subr.mxu0 %v3262_v0 }
 0x564   :  { %v3145_v32 = vpop.eup %3144 }
 0x565   :  { %446 = vrot.lane.b32.xlu0 %v3145_v32, %s3265_s21 }
 0x5d7   :  { %v447_v36 = vpop.permute.xlu0 %446 }
 0x5d8   :  { %v449_v41 = vmul.f32 %v447_v36, %v444_v34 }
 0x5da   :  { %v3570_v42 = vadd.f32 %v450_v37, %v449_v41 }
 0x5dc   :  { %v554_v43 = vsel %vm248_vm2, %v552_v26, %v3570_v42 }
 0x5dd   :  { %2831 = vmatmul.mubr.msk.f32.vlgmr.msra.gmra.mxu1 %vm353_vm3, %v554_v43 }
 0x5de   :  { %2864 = vmatpush3.msra.mxu1 %v3332_v1  ;;  %2871 = vmatprep.mubr.msk.f32.mxu1 %vm3263_vm0, %v3262_v0 }
 0x5df   :  { %2865 = vmatprep.subr.mxu1 %v3262_v0 }
 0x5e0   :  { %2866 = vmatpush3.msra.mxu1 %v3340_v3 }
 0x5e1   :  { %2867 = vmatprep.subr.mxu1 %v3262_v0 }
 0x5e2   :  { %2868 = vmatpush3.msra.mxu1 %v3355_v6 }
 0x5e3   :  { %2869 = vmatprep.subr.mxu1 %v3262_v0 }
 0x5e4   :  { %2870 = vmatpush3.msra.mxu1 %v3365_v8 }
 0x5e5   :  { %2874 = vmatprep.subr.mxu1 %v3262_v0 }
 0x613   :  { %v721_v44 = vpop.f32.mrf.mxu0 }
 0x614   :  { %v722_v45 = vadd.f32 %v3388_v9, %v721_v44 }
 0x615   :  { %v2843_v46 = vpop.f32.mrf.mxu0 }
 0x616   :  { %733 = vrot.lane.b32.xlu1 %v722_v45, %s3264_s15  ;;  %v725_v54 = vadd.f32 %v722_v45, %v220_v47 }
 0x618   :  { %v2549_v55 = vmul.f32 -1.442695, %v725_v54 }
 0x61a   :  { %3146 = vpow2.f32 %v2549_v55 }
 0x627   :  { %v3147_v56 = vpop.eup %3146 }
 0x628   :  { %v729_v57 = vadd.f32 1.0, %v3147_v56 }
 0x62a   :  { %3148 = vrcp.f32 %v729_v57 }
 0x637   :  { %v3149_v58 = vpop.eup %3148 }
 0x638   :  { %v743_v11 = vsub.f32 1.0, %v3149_v58  ;;  %v749_v15 = vmul.f32 %v3149_v58, %v3545_v22 }
 0x688   :  { %v734_v59 = vpop.permute.xlu1 %733 }
 0x689   :  { %v736_v60 = vmul.f32 %v3149_v58, %v734_v59 }
 0x68b   :  { %738 = vrot.lane.b32.xlu1 %v736_v60, %s3264_s15 }
 0x69d   :  { %v624_v61 = vpop.f32.mrf.mxu1 }
 0x69e   :  { %v625_v49 = vadd.f32 %v3539_v12, %v624_v61 }
 0x69f   :  { %v2832_v62 = vpop.f32.mrf.mxu1 }
 0x6a0   :  { %v2547_v5 = vmul.f32 -1.442695, %v625_v49 }
 0x6fd   :  { %v739_v63 = vpop.permute.xlu1 %738 }
 0x6fe   :  { %v741_v2 = vadd.f32 %v739_v63, %v220_v47 }
 0x700   :  { %3150 = vtanh.f32 %v741_v2 }
 0x701   :  { %3152 = vpow2.f32 %v2547_v5 }
 0x70d   :  { %v3151_v4 = vpop.eup %3150 }
 0x70e   :  { %745 = vrot.lane.b32.xlu1 %v3151_v4, %s3265_s21  ;;  %v3153_v7 = vpop.eup %3152 }
 0x70f   :  { %v631_v10 = vadd.f32 1.0, %v3153_v7 }
 0x711   :  { %3154 = vrcp.f32 %v631_v10 }
 0x712   :  { %635 = vrot.lane.b32.xlu1 %v625_v49, %s3266_s29 }
 0x71e   :  { %v3155_v19 = vpop.eup %3154 }
 0x71f   :  { %v645_v25 = vsub.f32 1.0, %v3155_v19  ;;  %v651_v27 = vmul.f32 %v3155_v19, %v3570_v42  ;;  %v225_v42 = vadd.f32 %v3519_v48, %v3397_v14 }
 0x780   :  { %v746_v13 = vpop.permute.xlu1 %745 }
 0x781   :  { %v748_v16 = vmul.f32 %v746_v13, %v743_v11 }
 0x783   :  { %v3594_v17 = vadd.f32 %v749_v15, %v748_v16 }
 0x784   :  { %v636_v18 = vpop.permute.xlu1 %635 }
 0x785   :  { %752 = vrot.lane.b32.xlu0 %v3594_v17, %s3265_s21  ;;  %v638_v20 = vmul.f32 %v3155_v19, %v636_v18 }
 0x789   :  { %640 = vrot.lane.b32.xlu0 %v638_v20, %s3264_s15 }
 0x7f7   :  { %v753_v21 = vpop.permute.xlu0 %752 }
 0x7f8   :  { %2872 = vmatmul.mubr.msk.f32.vlgmr.msra.gmra.mxu1 %vm248_vm2, %v753_v21 }
 0x7f9   :  { %2875 = vmatpush3.msra.mxu1 %v3410_v28  ;;  %2890 = vmatprep.mubr.msk.f32.mxu1 %vm3263_vm0, %v3262_v0 }
 0x7fa   :  { %2876 = vmatprep.subr.mxu1 %v3262_v0 }
 0x7fb   :  { %v641_v22 = vpop.permute.xlu0 %640  ;;  %2877 = vmatpush3.msra.mxu1 %v3416_v29 }
 0x7fc   :  { %v643_v23 = vadd.f32 %v641_v22, %v625_v49  ;;  %2878 = vmatprep.subr.mxu1 %v3262_v0 }
 0x7fd   :  { %2879 = vmatpush3.msra.mxu1 %v3427_v31 }
 0x7fe   :  { %3156 = vtanh.f32 %v643_v23  ;;  %2880 = vmatprep.subr.mxu1 %v3262_v0 }
 0x7ff   :  { %2881 = vmatpush3.msra.mxu1 %v3438_v33 }
 0x800   :  { %2882 = vmatprep.subr.mxu1 %v3262_v0 }
 0x801   :  { %2883 = vmatpush3.msra.mxu1 %v3449_v35 }
 0x802   :  { %2884 = vmatprep.subr.mxu1 %v3262_v0 }
 0x803   :  { %2885 = vmatpush3.msra.mxu1 %v3461_v38 }
 0x804   :  { %2886 = vmatprep.subr.mxu1 %v3262_v0 }
 0x805   :  { %2887 = vmatpush3.msra.mxu1 %v3469_v39 }
 0x806   :  { %2888 = vmatprep.subr.mxu1 %v3262_v0 }
 0x807   :  { %2889 = vmatpush3.msra.mxu1 %v3480_v40 }
 0x808   :  { %2923 = vmatprep.subr.mxu1 %v3262_v0 }
 0x80b   :  { %v3157_v24 = vpop.eup %3156 }
 0x80c   :  { %647 = vrot.lane.b32.xlu0 %v3157_v24, %s3265_s21 }
 0x87e   :  { %v648_v26 = vpop.permute.xlu0 %647 }
 0x87f   :  { %v650_v30 = vmul.f32 %v648_v26, %v645_v25 }
 0x881   :  { %v3620_v32 = vadd.f32 %v651_v27, %v650_v30  ;;  %v230_v30 = vadd.f32 %v3397_v14, %v3525_v51 }
 0x883   :  { %v755_v34 = vsel %vm248_vm2, %v753_v21, %v3620_v32 }
 0x884   :  { %2861 = vmatmul.mubr.msk.f32.vlgmr.msra.gmra.mxu0 %vm353_vm3, %v755_v34 }
 0x885   :  { %2894 = vmatpush3.msra.mxu0 %v3332_v1  ;;  %2901 = vmatprep.mubr.msk.f32.mxu0 %vm3263_vm0, %v3262_v0 }
 0x886   :  { %2895 = vmatprep.subr.mxu0 %v3262_v0 }
 0x887   :  { %2896 = vmatpush3.msra.mxu0 %v3340_v3 }
 0x888   :  { %2897 = vmatprep.subr.mxu0 %v3262_v0 }
 0x889   :  { %2898 = vmatpush3.msra.mxu0 %v3355_v6 }
 0x88a   :  { %2899 = vmatprep.subr.mxu0 %v3262_v0 }
 0x88b   :  { %2900 = vmatpush3.msra.mxu0 %v3365_v8 }
 0x88c   :  { %2904 = vmatprep.subr.mxu0 %v3262_v0 }
 0x8b8   :  { %v922_v36 = vpop.f32.mrf.mxu1 }
 0x8b9   :  { %v923_v37 = vadd.f32 %v3388_v9, %v922_v36 }
 0x8ba   :  { %v2873_v41 = vpop.f32.mrf.mxu1 }
 0x8bb   :  { %934 = vrot.lane.b32.xlu1 %v923_v37, %s3264_s15  ;;  %v926_v43 = vadd.f32 %v923_v37, %v225_v42 }
 0x8bd   :  { %v2553_v44 = vmul.f32 -1.442695, %v926_v43 }
 0x8bf   :  { %3158 = vpow2.f32 %v2553_v44 }
 0x8cc   :  { %v3159_v45 = vpop.eup %3158 }
 0x8cd   :  { %v930_v46 = vadd.f32 1.0, %v3159_v45 }
 0x8cf   :  { %3160 = vrcp.f32 %v930_v46 }
 0x8dc   :  { %v3161_v47 = vpop.eup %3160 }
 0x8dd   :  { %v944_v2 = vsub.f32 1.0, %v3161_v47  ;;  %v950_v49 = vmul.f32 %v3161_v47, %v3594_v17 }
 0x92d   :  { %v935_v54 = vpop.permute.xlu1 %934 }
 0x92e   :  { %v937_v55 = vmul.f32 %v3161_v47, %v935_v54 }
 0x930   :  { %939 = vrot.lane.b32.xlu1 %v937_v55, %s3264_s15 }
 0x944   :  { %v825_v56 = vpop.f32.mrf.mxu0 }
 0x945   :  { %v826_v48 = vadd.f32 %v3539_v12, %v825_v56 }
 0x946   :  { %v2862_v57 = vpop.f32.mrf.mxu0 }
 0x947   :  { %v2551_v61 = vmul.f32 -1.442695, %v826_v48 }
 0x9a2   :  { %v940_v58 = vpop.permute.xlu1 %939 }
 0x9a3   :  { %v942_v59 = vadd.f32 %v940_v58, %v225_v42 }
 0x9a5   :  { %3162 = vtanh.f32 %v942_v59 }
 0x9a6   :  { %3164 = vpow2.f32 %v2551_v61 }
 0x9b2   :  { %v3163_v60 = vpop.eup %3162 }
 0x9b3   :  { %946 = vrot.lane.b32.xlu0 %v3163_v60, %s3265_s21  ;;  %v3165_v62 = vpop.eup %3164 }
 0x9b4   :  { %v832_v63 = vadd.f32 1.0, %v3165_v62 }
 0x9b6   :  { %3166 = vrcp.f32 %v832_v63 }
 0x9b7   :  { %836 = vrot.lane.b32.xlu0 %v826_v48, %s3266_s29 }
 0x9c3   :  { %v3167_v11 = vpop.eup %3166 }
 0x9c4   :  { %v846_v19 = vsub.f32 1.0, %v3167_v11  ;;  %v852_v21 = vmul.f32 %v3167_v11, %v3620_v32 }
 0xa25   :  { %v947_v4 = vpop.permute.xlu0 %946 }
 0xa26   :  { %v949_v5 = vmul.f32 %v947_v4, %v944_v2 }
 0xa28   :  { %v3644_v7 = vadd.f32 %v950_v49, %v949_v5 }
 0xa29   :  { %v837_v10 = vpop.permute.xlu0 %836 }
 0xa2a   :  { %953 = vrot.lane.b32.xlu1 %v3644_v7, %s3265_s21  ;;  %v839_v13 = vmul.f32 %v3167_v11, %v837_v10 }
 0xa2e   :  { %841 = vrot.lane.b32.xlu1 %v839_v13, %s3264_s15 }
 0xa9c   :  { %v954_v15 = vpop.permute.xlu1 %953 }
 0xa9d   :  { %2902 = vmatmul.mubr.msk.f32.vlgmr.msra.gmra.mxu0 %vm248_vm2, %v954_v15 }
 0xa9e   :  { %2905 = vmatpush3.msra.mxu0 %v3410_v28  ;;  %2920 = vmatprep.mubr.msk.f32.mxu0 %vm3263_vm0, %v3262_v0 }
 0xa9f   :  { %2906 = vmatprep.subr.mxu0 %v3262_v0 }
 0xaa0   :  { %v842_v16 = vpop.permute.xlu1 %841  ;;  %2907 = vmatpush3.msra.mxu0 %v3416_v29 }
 0xaa1   :  { %v844_v17 = vadd.f32 %v842_v16, %v826_v48  ;;  %2908 = vmatprep.subr.mxu0 %v3262_v0 }
 0xaa2   :  { %2909 = vmatpush3.msra.mxu0 %v3427_v31 }
 0xaa3   :  { %3168 = vtanh.f32 %v844_v17  ;;  %2910 = vmatprep.subr.mxu0 %v3262_v0 }
 0xaa4   :  { %2911 = vmatpush3.msra.mxu0 %v3438_v33 }
 0xaa5   :  { %2912 = vmatprep.subr.mxu0 %v3262_v0 }
 0xaa6   :  { %2913 = vmatpush3.msra.mxu0 %v3449_v35 }
 0xaa7   :  { %2914 = vmatprep.subr.mxu0 %v3262_v0 }
 0xaa8   :  { %2915 = vmatpush3.msra.mxu0 %v3461_v38 }
 0xaa9   :  { %2916 = vmatprep.subr.mxu0 %v3262_v0 }
 0xaaa   :  { %2917 = vmatpush3.msra.mxu0 %v3469_v39 }
 0xaab   :  { %2918 = vmatprep.subr.mxu0 %v3262_v0 }
 0xaac   :  { %2919 = vmatpush3.msra.mxu0 %v3480_v40 }
 0xaad   :  { %2953 = vmatprep.subr.mxu0 %v3262_v0 }
 0xab0   :  { %v3169_v18 = vpop.eup %3168 }
 0xab1   :  { %848 = vrot.lane.b32.xlu0 %v3169_v18, %s3265_s21 }
 0xb23   :  { %v849_v20 = vpop.permute.xlu0 %848 }
 0xb24   :  { %v851_v22 = vmul.f32 %v849_v20, %v846_v19  ;;  %v235_v20 = vadd.f32 %v3523_v50, %v3397_v14 }
 0xb26   :  { %v3670_v23 = vadd.f32 %v852_v21, %v851_v22 }
 0xb28   :  { %v956_v24 = vsel %vm248_vm2, %v954_v15, %v3670_v23 }
 0xb29   :  { %2891 = vmatmul.mubr.msk.f32.vlgmr.msra.gmra.mxu1 %vm353_vm3, %v956_v24 }
 0xb2a   :  { %2924 = vmatpush3.msra.mxu1 %v3332_v1  ;;  %2931 = vmatprep.mubr.msk.f32.mxu1 %vm3263_vm0, %v3262_v0 }
 0xb2b   :  { %2925 = vmatprep.subr.mxu1 %v3262_v0 }
 0xb2c   :  { %2926 = vmatpush3.msra.mxu1 %v3340_v3 }
 0xb2d   :  { %2927 = vmatprep.subr.mxu1 %v3262_v0 }
 0xb2e   :  { %2928 = vmatpush3.msra.mxu1 %v3355_v6 }
 0xb2f   :  { %2929 = vmatprep.subr.mxu1 %v3262_v0 }
 0xb30   :  { %2930 = vmatpush3.msra.mxu1 %v3365_v8 }
 0xb31   :  { %2934 = vmatprep.subr.mxu1 %v3262_v0 }
 0xb5d   :  { %v1123_v25 = vpop.f32.mrf.mxu0 }
 0xb5e   :  { %v1124_v26 = vadd.f32 %v3388_v9, %v1123_v25 }
 0xb5f   :  { %v2903_v27 = vpop.f32.mrf.mxu0 }
 0xb60   :  { %1135 = vrot.lane.b32.xlu1 %v1124_v26, %s3264_s15  ;;  %v1127_v32 = vadd.f32 %v1124_v26, %v230_v30 }
 0xb62   :  { %v2557_v34 = vmul.f32 -1.442695, %v1127_v32 }
 0xb64   :  { %3170 = vpow2.f32 %v2557_v34 }
 0xb71   :  { %v3171_v36 = vpop.eup %3170 }
 0xb72   :  { %v1131_v37 = vadd.f32 1.0, %v3171_v36 }
 0xb74   :  { %3172 = vrcp.f32 %v1131_v37 }
 0xb81   :  { %v3173_v41 = vpop.eup %3172 }
 0xb82   :  { %v1145_v58 = vsub.f32 1.0, %v3173_v41  ;;  %v1151_v60 = vmul.f32 %v3173_v41, %v3644_v7 }
 0xbd2   :  { %v1136_v42 = vpop.permute.xlu1 %1135 }
 0xbd3   :  { %v1138_v43 = vmul.f32 %v3173_v41, %v1136_v42 }
 0xbd5   :  { %1140 = vrot.lane.b32.xlu0 %v1138_v43, %s3264_s15 }
 0xbe9   :  { %v1026_v44 = vpop.f32.mrf.mxu1 }
 0xbea   :  { %v1027_v51 = vadd.f32 %v3539_v12, %v1026_v44 }
 0xbeb   :  { %v2892_v45 = vpop.f32.mrf.mxu1 }
 0xbec   :  { %v2555_v55 = vmul.f32 -1.442695, %v1027_v51 }
 0xc47   :  { %v1141_v46 = vpop.permute.xlu0 %1140 }
 0xc48   :  { %v1143_v47 = vadd.f32 %v1141_v46, %v230_v30 }
 0xc4a   :  { %3174 = vtanh.f32 %v1143_v47 }
 0xc4b   :  { %3176 = vpow2.f32 %v2555_v55 }
 0xc57   :  { %v3175_v54 = vpop.eup %3174 }
 0xc58   :  { %1147 = vrot.lane.b32.xlu1 %v3175_v54, %s3265_s21  ;;  %v3177_v56 = vpop.eup %3176 }
 0xc59   :  { %v1033_v57 = vadd.f32 1.0, %v3177_v56 }
 0xc5b   :  { %3178 = vrcp.f32 %v1033_v57 }
 0xc5c   :  { %1037 = vrot.lane.b32.xlu1 %v1027_v51, %s3266_s29 }
 0xc68   :  { %v3179_v63 = vpop.eup %3178 }
 0xc69   :  { %v1047_v10 = vsub.f32 1.0, %v3179_v63  ;;  %v1053_v13 = vmul.f32 %v3179_v63, %v3670_v23 }
 0xcca   :  { %v1148_v59 = vpop.permute.xlu1 %1147 }
 0xccb   :  { %v1150_v48 = vmul.f32 %v1148_v59, %v1145_v58  ;;  %v3250_v58 = vld [vmem:[%s4140_s3 + $0x8] sm:$0xff]  ;;  %v3251_v59 = vld [vmem:[%s4140_s3] sm:$0xff] }
 0xccd   :  { %v3694_v61 = vadd.f32 %v1151_v60, %v1150_v48 }
 0xcce   :  { %v1038_v62 = vpop.permute.xlu1 %1037 }
 0xccf   :  { %1154 = vrot.lane.b32.xlu0 %v3694_v61, %s3265_s21  ;;  %v1040_v2 = vmul.f32 %v3179_v63, %v1038_v62 }
 0xcd3   :  { %1042 = vrot.lane.b32.xlu0 %v1040_v2, %s3264_s15 }
 0xd41   :  { %v1155_v4 = vpop.permute.xlu0 %1154 }
 0xd42   :  { %2932 = vmatmul.mubr.msk.f32.vlgmr.msra.gmra.mxu1 %vm248_vm2, %v1155_v4 }
 0xd43   :  { %2935 = vmatpush3.msra.mxu1 %v3410_v28  ;;  %2950 = vmatprep.mubr.msk.f32.mxu1 %vm3263_vm0, %v3262_v0 }
 0xd44   :  { %2936 = vmatprep.subr.mxu1 %v3262_v0 }
 0xd45   :  { %v1043_v49 = vpop.permute.xlu0 %1042  ;;  %2937 = vmatpush3.msra.mxu1 %v3416_v29 }
 0xd46   :  { %v1045_v5 = vadd.f32 %v1043_v49, %v1027_v51  ;;  %2938 = vmatprep.subr.mxu1 %v3262_v0 }
 0xd47   :  { %2939 = vmatpush3.msra.mxu1 %v3427_v31 }
 0xd48   :  { %3180 = vtanh.f32 %v1045_v5  ;;  %2940 = vmatprep.subr.mxu1 %v3262_v0 }
 0xd49   :  { %2941 = vmatpush3.msra.mxu1 %v3438_v33 }
 0xd4a   :  { %2942 = vmatprep.subr.mxu1 %v3262_v0 }
 0xd4b   :  { %2943 = vmatpush3.msra.mxu1 %v3449_v35 }
 0xd4c   :  { %2944 = vmatprep.subr.mxu1 %v3262_v0 }
 0xd4d   :  { %2945 = vmatpush3.msra.mxu1 %v3461_v38 }
 0xd4e   :  { %2946 = vmatprep.subr.mxu1 %v3262_v0 }
 0xd4f   :  { %2947 = vmatpush3.msra.mxu1 %v3469_v39 }
 0xd50   :  { %2948 = vmatprep.subr.mxu1 %v3262_v0 }
 0xd51   :  { %2949 = vmatpush3.msra.mxu1 %v3480_v40 }
 0xd52   :  { %2983 = vmatprep.subr.mxu1 %v3262_v0 }
 0xd55   :  { %v3181_v7 = vpop.eup %3180 }
 0xd56   :  { %1049 = vrot.lane.b32.xlu1 %v3181_v7, %s3265_s21 }
 0xdc8   :  { %v1050_v11 = vpop.permute.xlu1 %1049 }
 0xdc9   :  { %v1052_v15 = vmul.f32 %v1050_v11, %v1047_v10 }
 0xdcb   :  { %v3720_v16 = vadd.f32 %v1053_v13, %v1052_v15 }
 0xdcd   :  { %v1157_v17 = vsel %vm248_vm2, %v1155_v4, %v3720_v16  ;;  %v240_v4 = vadd.f32 %v3397_v14, %v3529_v53 }
 0xdce   :  { %2921 = vmatmul.mubr.msk.f32.vlgmr.msra.gmra.mxu0 %vm353_vm3, %v1157_v17 }
 0xdcf   :  { %2954 = vmatpush3.msra.mxu0 %v3332_v1  ;;  %2961 = vmatprep.mubr.msk.f32.mxu0 %vm3263_vm0, %v3262_v0 }
 0xdd0   :  { %2955 = vmatprep.subr.mxu0 %v3262_v0 }
 0xdd1   :  { %2956 = vmatpush3.msra.mxu0 %v3340_v3 }
 0xdd2   :  { %2957 = vmatprep.subr.mxu0 %v3262_v0 }
 0xdd3   :  { %2958 = vmatpush3.msra.mxu0 %v3355_v6 }
 0xdd4   :  { %2959 = vmatprep.subr.mxu0 %v3262_v0 }
 0xdd5   :  { %2960 = vmatpush3.msra.mxu0 %v3365_v8 }
 0xdd6   :  { %2964 = vmatprep.subr.mxu0 %v3262_v0 }
 0xe02   :  { %v1324_v18 = vpop.f32.mrf.mxu1 }
 0xe03   :  { %v1325_v1 = vadd.f32 %v3388_v9, %v1324_v18 }
 0xe04   :  { %v2933_v19 = vpop.f32.mrf.mxu1 }
 0xe05   :  { %1336 = vrot.lane.b32.xlu0 %v1325_v1, %s3264_s15  ;;  %v1328_v3 = vadd.f32 %v1325_v1, %v235_v20 }
 0xe07   :  { %v2561_v21 = vmul.f32 -1.442695, %v1328_v3 }
 0xe09   :  { %3182 = vpow2.f32 %v2561_v21 }
 0xe16   :  { %v3183_v22 = vpop.eup %3182 }
 0xe17   :  { %v1332_v6 = vadd.f32 1.0, %v3183_v22 }
 0xe19   :  { %3184 = vrcp.f32 %v1332_v6 }
 0xe26   :  { %v3185_v23 = vpop.eup %3184 }
 0xe27   :  { %v1346_v44 = vsub.f32 1.0, %v3185_v23  ;;  %v1352_v46 = vmul.f32 %v3185_v23, %v3694_v61 }
 0xe77   :  { %v1337_v24 = vpop.permute.xlu0 %1336 }
 0xe78   :  { %v1339_v8 = vmul.f32 %v3185_v23, %v1337_v24 }
 0xe7a   :  { %1341 = vrot.lane.b32.xlu1 %v1339_v8, %s3264_s15 }
 0xe8e   :  { %v1227_v25 = vpop.f32.mrf.mxu0 }
 0xe8f   :  { %v1228_v26 = vadd.f32 %v3539_v12, %v1227_v25 }
 0xe90   :  { %v2922_v27 = vpop.f32.mrf.mxu0 }
 0xe91   :  { %1238 = vrot.lane.b32.xlu1 %v1228_v26, %s3266_s29  ;;  %v2559_v30 = vmul.f32 -1.442695, %v1228_v26 }
 0xe93   :  { %3186 = vpow2.f32 %v2559_v30 }
 0xea0   :  { %v3187_v34 = vpop.eup %3186 }
 0xea1   :  { %v1234_v36 = vadd.f32 1.0, %v3187_v34 }
 0xeec   :  { %v1342_v50 = vpop.permute.xlu1 %1341 }
 0xeed   :  { %v1344_v32 = vadd.f32 %v1342_v50, %v235_v20 }
 0xeef   :  { %3188 = vtanh.f32 %v1344_v32 }
 0xef0   :  { %3190 = vrcp.f32 %v1234_v36 }
 0xefc   :  { %v3189_v37 = vpop.eup %3188 }
 0xefd   :  { %1348 = vrot.lane.b32.xlu0 %v3189_v37, %s3265_s21  ;;  %v3191_v41 = vpop.eup %3190  ;;  %v3252_v37 = vld [vmem:[%s4144_s4 + $0x38] sm:$0xff] }
 0xf03   :  { %v1239_v42 = vpop.permute.xlu1 %1238 }
 0xf04   :  { %v1241_v43 = vmul.f32 %v3191_v41, %v1239_v42  ;;  %v3254_v42 = vld [vmem:[%s4144_s4 + $0x28] sm:$0xff] }
 0xf06   :  { %1243 = vrot.lane.b32.xlu1 %v1241_v43, %s3264_s15  ;;  %v3255_v43 = vld [vmem:[%s4144_s4 + $0x20] sm:$0xff] }
 0xf6f   :  { %v1349_v45 = vpop.permute.xlu0 %1348 }
 0xf70   :  { %v1351_v47 = vmul.f32 %v1349_v45, %v1346_v44  ;;  %v3256_v44 = vld [vmem:[%s4144_s4 + $0x18] sm:$0xff]  ;;  %v3257_v45 = vld [vmem:[%s4144_s4 + $0x10] sm:$0xff] }
 0xf72   :  { %v3745_v54 = vadd.f32 %v1352_v46, %v1351_v47  ;;  %v3258_v46 = vld [vmem:[%s4144_s4 + $0x8] sm:$0xff]  ;;  %v3259_v47 = vld [vmem:[%s4144_s4] sm:$0xff] }
 0xf74   :  { %1355 = vrot.lane.b32.xlu0 %v3745_v54, %s3265_s21 }
 0xf78   :  { %v1244_v51 = vpop.permute.xlu1 %1243 }
 0xf79   :  { %v1246_v55 = vadd.f32 %v1244_v51, %v1228_v26  ;;  %v3260_v51 = vld [vmem:[%s4143_s2 + $0x1] ss:$0 sm:$0xff] }
 0xf7b   :  { %3192 = vtanh.f32 %v1246_v55 }
 0xf88   :  { %v3193_v56 = vpop.eup %3192 }
 0xf89   :  { %1250 = vrot.lane.b32.xlu0 %v3193_v56, %s3265_s21 }
 0xfe6   :  { %v1356_v57 = vpop.permute.xlu0 %1355 }
 0xfe7   :  { %2962 = vmatmul.mubr.msk.f32.vlgmr.msra.gmra.mxu0 %vm248_vm2, %v1356_v57 }
 0xfe8   :  { %2965 = vmatpush3.msra.mxu0 %v3410_v28  ;;  %2980 = vmatprep.mubr.msk.f32.mxu0 %vm3263_vm0, %v3262_v0  ;;  %v1248_v28 = vsub.f32 1.0, %v3191_v41 }
 0xfe9   :  { %2966 = vmatprep.subr.mxu0 %v3262_v0 }
 0xfea   :  { %2967 = vmatpush3.msra.mxu0 %v3416_v29 }
 0xfeb   :  { %2968 = vmatprep.subr.mxu0 %v3262_v0 }
 0xfec   :  { %2969 = vmatpush3.msra.mxu0 %v3427_v31  ;;  %v1254_v31 = vmul.f32 %v3191_v41, %v3720_v16  ;;  %v3253_v41 = vld [vmem:[%s4144_s4 + $0x30] sm:$0xff] }
 0xfed   :  { %2970 = vmatprep.subr.mxu0 %v3262_v0 }
 0xfee   :  { %2971 = vmatpush3.msra.mxu0 %v3438_v33 }
 0xfef   :  { %2972 = vmatprep.subr.mxu0 %v3262_v0 }
 0xff0   :  { %2973 = vmatpush3.msra.mxu0 %v3449_v35 }
 0xff1   :  { %2974 = vmatprep.subr.mxu0 %v3262_v0 }
 0xff2   :  { %2975 = vmatpush3.msra.mxu0 %v3461_v38 }
 0xff3   :  { %2976 = vmatprep.subr.mxu0 %v3262_v0 }
 0xff4   :  { %2977 = vmatpush3.msra.mxu0 %v3469_v39  ;;  %v3248_v39 = vld [vmem:[%s4140_s3 + $0x18] sm:$0xff] }
 0xff5   :  { %2978 = vmatprep.subr.mxu0 %v3262_v0 }
 0xff6   :  { %2979 = vmatpush3.msra.mxu0 %v3480_v40  ;;  %v3249_v40 = vld [vmem:[%s4140_s3 + $0x10] sm:$0xff] }
 0xff7   :  { %3013 = vmatprep.subr.mxu0 %v3262_v0 }
 0xffb   :  { %v1251_v29 = vpop.permute.xlu0 %1250 }
 0xffc   :  { %v1253_v33 = vmul.f32 %v1251_v29, %v1248_v28 }
 0xffe   :  { %v3770_v35 = vadd.f32 %v1254_v31, %v1253_v33  ;;  %v3261_v31 = vld [vmem:[%s4143_s2] ss:$0 sm:$0xff] }
 0xfff   :  { %v245_v33 = vadd.f32 %v3261_v31, %v3527_v52 }
0x1000   :  { %v1358_v38 = vsel %vm248_vm2, %v1356_v57, %v3770_v35 }
0x1001   :  { %2951 = vmatmul.mubr.msk.f32.vlgmr.msra.gmra.mxu1 %vm353_vm3, %v1358_v38 }
0x1002   :  { %2984 = vmatpush3.msra.mxu1 %v3248_v39  ;;  %2991 = vmatprep.mubr.msk.f32.mxu1 %vm3263_vm0, %v3262_v0 }
0x1003   :  { %2985 = vmatprep.subr.mxu1 %v3262_v0 }
0x1004   :  { %2986 = vmatpush3.msra.mxu1 %v3249_v40 }
0x1005   :  { %2987 = vmatprep.subr.mxu1 %v3262_v0 }
0x1006   :  { %2988 = vmatpush3.msra.mxu1 %v3250_v58 }
0x1007   :  { %2989 = vmatprep.subr.mxu1 %v3262_v0 }
0x1008   :  { %2990 = vmatpush3.msra.mxu1 %v3251_v59 }
0x1009   :  { %2994 = vmatprep.subr.mxu1 %v3262_v0 }
0x10a7   :  { %v1525_v60 = vpop.f32.mrf.mxu0 }
0x10a8   :  { %v1526_v48 = vadd.f32 %v3388_v9, %v1525_v60 }
0x10a9   :  { %v2963_v61 = vpop.f32.mrf.mxu0 }
0x10aa   :  { %1537 = vrot.lane.b32.xlu1 %v1526_v48, %s3264_s15  ;;  %v1529_v49 = vadd.f32 %v1526_v48, %v240_v4 }
0x10ac   :  { %v2565_v5 = vmul.f32 -1.442695, %v1529_v49 }
0x10ae   :  { %3194 = vpow2.f32 %v2565_v5 }
0x10bb   :  { %v3195_v7 = vpop.eup %3194 }
0x10bc   :  { %v1533_v10 = vadd.f32 1.0, %v3195_v7 }
0x10be   :  { %3196 = vrcp.f32 %v1533_v10 }
0x10c1   :  { %v1428_v62 = vpop.f32.mrf.mxu1 }
0x10c2   :  { %v1429_v63 = vadd.f32 %v3539_v12, %v1428_v62 }
0x10c3   :  { %v2952_v2 = vpop.f32.mrf.mxu1 }
0x10c4   :  { %1439 = vrot.lane.b32.xlu1 %v1429_v63, %s3266_s29  ;;  %v2563_v11 = vmul.f32 -1.442695, %v1429_v63 }
0x10c6   :  { %3198 = vpow2.f32 %v2563_v11 }
0x10cb   :  { %v3197_v9 = vpop.eup %3196 }
0x10cc   :  { %v1547_v6 = vsub.f32 1.0, %v3197_v9  ;;  %v1553_v24 = vmul.f32 %v3197_v9, %v3745_v54 }
0x10d3   :  { %v3199_v16 = vpop.eup %3198 }
0x10d4   :  { %v1435_v17 = vadd.f32 1.0, %v3199_v16 }
0x10d6   :  { %3200 = vrcp.f32 %v1435_v17 }
0x10e3   :  { %v3201_v18 = vpop.eup %3200 }
0x10e4   :  { %v1449_v27 = vsub.f32 1.0, %v3201_v18  ;;  %v1455_v50 = vmul.f32 %v3201_v18, %v3770_v35 }
0x111c   :  { %v1538_v13 = vpop.permute.xlu1 %1537 }
0x111d   :  { %v1540_v15 = vmul.f32 %v3197_v9, %v1538_v13 }
0x111f   :  { %1542 = vrot.lane.b32.xlu0 %v1540_v15, %s3264_s15 }
0x1136   :  { %v1440_v1 = vpop.permute.xlu1 %1439 }
0x1137   :  { %v1442_v19 = vmul.f32 %v3201_v18, %v1440_v1 }
0x1139   :  { %1444 = vrot.lane.b32.xlu1 %v1442_v19, %s3264_s15 }
0x1191   :  { %v1543_v14 = vpop.permute.xlu0 %1542 }
0x1192   :  { %v1545_v53 = vadd.f32 %v1543_v14, %v240_v4 }
0x1194   :  { %3202 = vtanh.f32 %v1545_v53 }
0x11a1   :  { %v3203_v20 = vpop.eup %3202 }
0x11a2   :  { %1549 = vrot.lane.b32.xlu0 %v3203_v20, %s3265_s21 }
0x11ab   :  { %v1445_v3 = vpop.permute.xlu1 %1444 }
0x11ac   :  { %v1447_v21 = vadd.f32 %v1445_v3, %v1429_v63 }
0x11ae   :  { %3204 = vtanh.f32 %v1447_v21 }
0x11bb   :  { %v3205_v22 = vpop.eup %3204 }
0x11bc   :  { %1451 = vrot.lane.b32.xlu1 %v3205_v22, %s3265_s21 }
0x1214   :  { %v1550_v23 = vpop.permute.xlu0 %1549 }
0x1215   :  { %v1552_v8 = vmul.f32 %v1550_v23, %v1547_v6 }
0x1217   :  { %v3804_v25 = vadd.f32 %v1553_v24, %v1552_v8 }
0x1219   :  { %1556 = vrot.lane.b32.xlu0 %v3804_v25, %s3265_s21 }
0x122e   :  { %v1452_v26 = vpop.permute.xlu1 %1451 }
0x122f   :  { %v1454_v30 = vmul.f32 %v1452_v26, %v1449_v27 }
0x1231   :  { %v3809_v32 = vadd.f32 %v1455_v50, %v1454_v30 }
0x128b   :  { %v1557_v34 = vpop.permute.xlu0 %1556 }
0x128c   :  { %v1559_v36 = vsel %vm248_vm2, %v1557_v34, %v3809_v32  ;;  %2992 = vmatmul.mubr.msk.f32.vlgmr.msra.gmra.mxu1 %vm248_vm2, %v1557_v34  ;;  %v91_v34 = vld [vmem:[%s4146_s6 + $0x8] sm:$0xff] }
0x128d   :  { %2981 = vmatmul.mubr.msk.f32.vlgmr.msra.gmra.mxu0 %vm353_vm3, %v1559_v36  ;;  %2995 = vmatpush3.msra.mxu1 %v3252_v37  ;;  %v90_v36 = vld [vmem:[%s4146_s6] sm:$0xff] }
0x128e   :  { %2996 = vmatprep.subr.mxu1 %v3262_v0  ;;  %3010 = vmatprep.mubr.msk.f32.mxu1 %vm3263_vm0, %v3262_v0 }
0x128f   :  { %2997 = vmatpush3.msra.mxu1 %v3253_v41  ;;  %3021 = vmatprep.mubr.msk.f32.mxu0 %vm3263_vm0, %v3262_v0 }
0x1290   :  { %2998 = vmatprep.subr.mxu1 %v3262_v0 }
0x1291   :  { %2999 = vmatpush3.msra.mxu1 %v3254_v42 }
0x1292   :  { %3000 = vmatprep.subr.mxu1 %v3262_v0 }
0x1293   :  { %3001 = vmatpush3.msra.mxu1 %v3255_v43 }
0x1294   :  { %3002 = vmatprep.subr.mxu1 %v3262_v0 }
0x1295   :  { %3003 = vmatpush3.msra.mxu1 %v3256_v44 }
0x1296   :  { %3004 = vmatprep.subr.mxu1 %v3262_v0 }
0x1297   :  { %3005 = vmatpush3.msra.mxu1 %v3257_v45 }
0x1298   :  { %3006 = vmatprep.subr.mxu1 %v3262_v0 }
0x1299   :  { %3007 = vmatpush3.msra.mxu1 %v3258_v46  ;;  %v3902_v46 = vld [vmem:[%s4144_s4 + $0x78] sm:$0xff] }
0x129a   :  { %3008 = vmatprep.subr.mxu1 %v3262_v0 }
0x129b   :  { %3009 = vmatpush3.msra.mxu1 %v3259_v47 }
0x129c   :  { %3043 = vmatprep.subr.mxu1 %v3262_v0 }
0x134c   :  { %v1726_v54 = vpop.f32.mrf.mxu1 }
0x134d   :  { %v1727_v55 = vadd.f32 %v3260_v51, %v1726_v54  ;;  %v1629_v56 = vpop.f32.mrf.mxu0  ;;  %v3908_v54 = vld [vmem:[%s4144_s4 + $0x70] sm:$0xff]  ;;  %v3917_v51 = vld [vmem:[%s4144_s4 + $0x68] sm:$0xff] }
0x134e   :  { %v1630_v57 = vadd.f32 %v3539_v12, %v1629_v56  ;;  %v2993_v28 = vpop.f32.mrf.mxu1  ;;  %v3931_v56 = vld [vmem:[%s4144_s4 + $0x58] sm:$0xff] }
0x134f   :  { %1738 = vrot.lane.b32.xlu0 %v1727_v55, %s3264_s15  ;;  %v2982_v29 = vpop.f32.mrf.mxu0  ;;  %v1730_v35 = vadd.f32 %v1727_v55, %v245_v33  ;;  %v3924_v55 = vld [vmem:[%s4144_s4 + $0x60] sm:$0xff]  ;;  %v3945_v28 = vld [vmem:[%s4144_s4 + $0x48] sm:$0xff] }
0x1350   :  { %1640 = vrot.lane.b32.xlu1 %v1630_v57, %s3266_s29  ;;  %v2567_v39 = vmul.f32 -1.442695, %v1630_v57  ;;  %v3952_v29 = vld [vmem:[%s4144_s4 + $0x40] sm:$0xff] }
0x1351   :  { %v2569_v38 = vmul.f32 -1.442695, %v1730_v35 }
0x1353   :  { %3206 = vpow2.f32 %v2569_v38 }
0x1354   :  { %3208 = vpow2.f32 %v2567_v39 }
0x1360   :  { %v3207_v40 = vpop.eup %3206 }
0x1361   :  { %v3209_v58 = vpop.eup %3208  ;;  %v1734_v59 = vadd.f32 1.0, %v3207_v40  ;;  %v3972_v40 = vld [vmem:[%s4145_s5 + $0x1] ss:$0 sm:$0xff] }
0x1362   :  { %v1636_v60 = vadd.f32 1.0, %v3209_v58 }
0x1363   :  { %3210 = vrcp.f32 %v1734_v59 }
0x1364   :  { %3212 = vrcp.f32 %v1636_v60 }
0x1370   :  { %v3211_v48 = vpop.eup %3210 }
0x1371   :  { %v3213_v62 = vpop.eup %3212  ;;  %v1748_v9 = vsub.f32 1.0, %v3211_v48  ;;  %v1754_v15 = vmul.f32 %v3211_v48, %v3804_v25 }
0x1372   :  { %v1650_v1 = vsub.f32 1.0, %v3213_v62  ;;  %v1656_v14 = vmul.f32 %v3213_v62, %v3809_v32  ;;  %v92_v32 = vld [vmem:[%s4146_s6 + $0x10] sm:$0xff] }
0x13c1   :  { %v1739_v61 = vpop.permute.xlu0 %1738 }
0x13c2   :  { %v1741_v63 = vmul.f32 %v3211_v48, %v1739_v61  ;;  %v1641_v2 = vpop.permute.xlu1 %1640 }
0x13c3   :  { %v1643_v4 = vmul.f32 %v3213_v62, %v1641_v2 }
0x13c4   :  { %1743 = vrot.lane.b32.xlu0 %v1741_v63, %s3264_s15 }
0x13c5   :  { %1645 = vrot.lane.b32.xlu1 %v1643_v4, %s3264_s15 }
0x1436   :  { %v1744_v52 = vpop.permute.xlu0 %1743 }
0x1437   :  { %v1746_v49 = vadd.f32 %v1744_v52, %v245_v33  ;;  %v1646_v5 = vpop.permute.xlu1 %1645  ;;  %v2572_v33 = vld [vmem:[%s4147_s7] ss:$0 sm:$0xff] }
0x1438   :  { %v1648_v7 = vadd.f32 %v1646_v5, %v1630_v57  ;;  %v3938_v57 = vld [vmem:[%s4144_s4 + $0x50] sm:$0xff]  ;;  %v3980_v5 = vld [vmem:[%s4144_s4 + $0xb8] sm:$0xff] }
0x1439   :  { %3214 = vtanh.f32 %v1746_v49 }
0x143a   :  { %3216 = vtanh.f32 %v1648_v7  ;;  %v3985_v7 = vld [vmem:[%s4144_s4 + $0xb0] sm:$0xff] }
0x1446   :  { %v3215_v10 = vpop.eup %3214 }
0x1447   :  { %v3217_v11 = vpop.eup %3216  ;;  %1750 = vrot.lane.b32.xlu0 %v3215_v10, %s3265_s21  ;;  %v3992_v10 = vld [vmem:[%s4144_s4 + $0xa8] sm:$0xff] }
0x1448   :  { %1652 = vrot.lane.b32.xlu1 %v3217_v11, %s3265_s21  ;;  %v3999_v11 = vld [vmem:[%s4144_s4 + $0xa0] sm:$0xff] }
0x14b9   :  { %v1751_v13 = vpop.permute.xlu0 %1750 }
0x14ba   :  { %v1753_v16 = vmul.f32 %v1751_v13, %v1748_v9  ;;  %v1653_v18 = vpop.permute.xlu1 %1652  ;;  %v4006_v9 = vld [vmem:[%s4144_s4 + $0x98] sm:$0xff] }
0x14bb   :  { %v1655_v19 = vmul.f32 %v1653_v18, %v1650_v1  ;;  %v4030_v18 = vld [vmem:[%s4144_s4 + $0x80] sm:$0xff] }
0x14bc   :  { %v3866_v17 = vadd.f32 %v1754_v15, %v1753_v16  ;;  %v4013_v15 = vld [vmem:[%s4144_s4 + $0x90] sm:$0xff]  ;;  %v4021_v16 = vld [vmem:[%s4144_s4 + $0x88] sm:$0xff] }
0x14bd   :  { %v1657_v53 = vadd.f32 %v1656_v14, %v1655_v19 }
0x14be   :  { %1757 = vrot.lane.b32.xlu0 %v3866_v17, %s3265_s21  ;;  %v1942_v31 = vsel %vm248_vm2, 0.0, %v3866_v17 }
0x1530   :  { %v1758_v20 = vpop.permute.xlu0 %1757 }
0x1531   :  { %v1760_v3 = vsel %vm248_vm2, %v1758_v20, %v1657_v53 }
0x1532   :  { %3011 = vmatmul.mubr.msk.f32.vlgmr.msra.gmra.mxu1 %vm353_vm3, %v1760_v3 }
0x1533   :  { %3059 = vmatprep.mubr.msk.f32.mxu1 %vm3263_vm0, %v3262_v0  ;;  %3044 = vmatpush3.msra.mxu1 %v3980_v5 }
0x1534   :  { %3045 = vmatprep.subr.mxu1 %v3262_v0 }
0x1535   :  { %3046 = vmatpush3.msra.mxu1 %v3985_v7 }
0x1536   :  { %3047 = vmatprep.subr.mxu1 %v3262_v0 }
0x1537   :  { %3048 = vmatpush3.msra.mxu1 %v3992_v10 }
0x1538   :  { %3049 = vmatprep.subr.mxu1 %v3262_v0 }
0x1539   :  { %3050 = vmatpush3.msra.mxu1 %v3999_v11 }
0x153a   :  { %3051 = vmatprep.subr.mxu1 %v3262_v0 }
0x153b   :  { %3052 = vmatpush3.msra.mxu1 %v4006_v9 }
0x153c   :  { %3053 = vmatprep.subr.mxu1 %v3262_v0 }
0x153d   :  { %3054 = vmatpush3.msra.mxu1 %v4013_v15 }
0x153e   :  { %3055 = vmatprep.subr.mxu1 %v3262_v0 }
0x153f   :  { %3056 = vmatpush3.msra.mxu1 %v4021_v16 }
0x1540   :  { %3057 = vmatprep.subr.mxu1 %v3262_v0 }
0x1541   :  { %3058 = vmatpush3.msra.mxu1 %v4030_v18 }
0x1542   :  { %3073 = vmatprep.subr.mxu1 %v3262_v0 }
0x15f2   :  { %v1830_v21 = vpop.f32.mrf.mxu1 }
0x15f3   :  { %v1831_v22 = vadd.f32 %v3539_v12, %v1830_v21  ;;  %v93_v12 = vld [vmem:[%s4146_s6 + $0x18] sm:$0xff] }
0x15f4   :  { %v3012_v6 = vpop.f32.mrf.mxu1  ;;  %3014 = vmatpush3.msra.mxu0 %v93_v12 }
0x15f5   :  { %1841 = vrot.lane.b32.xlu1 %v1831_v22, %s3266_s29  ;;  %v2571_v23 = vmul.f32 -1.442695, %v1831_v22  ;;  %3015 = vmatprep.subr.mxu0 %v3262_v0 }
0x15f6   :  { %3016 = vmatpush3.msra.mxu0 %v92_v32  ;;  %v98_v32 = vld [vmem:[%s4149_s8 + $0x18] sm:$0xff] }
0x15f7   :  { %3218 = vpow2.f32 %v2571_v23  ;;  %3017 = vmatprep.subr.mxu0 %v3262_v0 }
0x15f8   :  { %3018 = vmatpush3.msra.mxu0 %v91_v34  ;;  %v97_v34 = vld [vmem:[%s4149_s8 + $0x10] sm:$0xff] }
0x15f9   :  { %3019 = vmatprep.subr.mxu0 %v3262_v0 }
0x15fa   :  { %3020 = vmatpush3.msra.mxu0 %v90_v36  ;;  %v96_v36 = vld [vmem:[%s4149_s8 + $0x8] sm:$0xff] }
0x15fb   :  { %3024 = vmatprep.subr.mxu0 %v3262_v0 }
0x1604   :  { %v3219_v24 = vpop.eup %3218 }
0x1605   :  { %v1837_v8 = vadd.f32 1.0, %v3219_v24 }
0x1607   :  { %3220 = vrcp.f32 %v1837_v8 }
0x1614   :  { %v3221_v25 = vpop.eup %3220 }
0x1615   :  { %v1851_v41 = vsub.f32 1.0, %v3221_v25  ;;  %v1857_v43 = vmul.f32 %v3221_v25, %v1657_v53 }
0x1667   :  { %v1842_v26 = vpop.permute.xlu1 %1841 }
0x1668   :  { %v1844_v27 = vmul.f32 %v3221_v25, %v1842_v26 }
0x166a   :  { %1846 = vrot.lane.b32.xlu0 %v1844_v27, %s3264_s15 }
0x16dc   :  { %v1847_v30 = vpop.permute.xlu0 %1846 }
0x16dd   :  { %v1849_v50 = vadd.f32 %v1847_v30, %v1831_v22 }
0x16df   :  { %3222 = vtanh.f32 %v1849_v50 }
0x16ec   :  { %v3223_v37 = vpop.eup %3222 }
0x16ed   :  { %1853 = vrot.lane.b32.xlu1 %v3223_v37, %s3265_s21  ;;  %v95_v37 = vld [vmem:[%s4149_s8] sm:$0xff] }
0x175f   :  { %v1854_v42 = vpop.permute.xlu1 %1853 }
0x1760   :  { %v1856_v44 = vmul.f32 %v1854_v42, %v1851_v41 }
0x1762   :  { %v3895_v45 = vadd.f32 %v1857_v43, %v1856_v44 }
0x1764   :  { %1866 = vrot.lane.b32.xlu0 %v3895_v45, %s3265_s21 }
0x17d6   :  { %v1867_v47 = vpop.permute.xlu0 %1866 }
0x17d7   :  { %3022 = vmatmul.mubr.msk.f32.vlgmr.msra.gmra.mxu0 %vm248_vm2, %v1867_v47 }
0x17d8   :  { %3025 = vmatpush3.msra.mxu0 %v3902_v46  ;;  %3040 = vmatprep.mubr.msk.f32.mxu0 %vm3263_vm0, %v3262_v0 }
0x17d9   :  { %3026 = vmatprep.subr.mxu0 %v3262_v0 }
0x17da   :  { %3027 = vmatpush3.msra.mxu0 %v3908_v54 }
0x17db   :  { %3028 = vmatprep.subr.mxu0 %v3262_v0 }
0x17dc   :  { %3029 = vmatpush3.msra.mxu0 %v3917_v51 }
0x17dd   :  { %3030 = vmatprep.subr.mxu0 %v3262_v0 }
0x17de   :  { %3031 = vmatpush3.msra.mxu0 %v3924_v55 }
0x17df   :  { %3032 = vmatprep.subr.mxu0 %v3262_v0 }
0x17e0   :  { %3033 = vmatpush3.msra.mxu0 %v3931_v56 }
0x17e1   :  { %3034 = vmatprep.subr.mxu0 %v3262_v0 }
0x17e2   :  { %3035 = vmatpush3.msra.mxu0 %v3938_v57 }
0x17e3   :  { %3036 = vmatprep.subr.mxu0 %v3262_v0 }
0x17e4   :  { %3037 = vmatpush3.msra.mxu0 %v3945_v28 }
0x17e5   :  { %3038 = vmatprep.subr.mxu0 %v3262_v0 }
0x17e6   :  { %3039 = vmatpush3.msra.mxu0 %v3952_v29 }
0x17e7   :  { %3041 = vmatmul.mubr.msk.f32.vlgmr.msra.gmra.mxu0 %vm353_vm3, %v1942_v31  ;;  %3062 = vmatprep.subr.mxu0 %v3262_v0 }
0x17e8   :  { %3070 = vmatprep.mubr.msk.f32.mxu0 %vm3263_vm0, %v3262_v0  ;;  %3063 = vmatpush3.msra.mxu0 %v98_v32 }
0x17e9   :  { %3064 = vmatprep.subr.mxu0 %v3262_v0 }
0x17ea   :  { %3065 = vmatpush3.msra.mxu0 %v97_v34 }
0x17eb   :  { %3066 = vmatprep.subr.mxu0 %v3262_v0 }
0x17ec   :  { %3067 = vmatpush3.msra.mxu0 %v96_v36 }
0x17ed   :  { %3068 = vmatprep.subr.mxu0 %v3262_v0 }
0x17ee   :  { %3069 = vmatpush3.msra.mxu0 %v95_v37 }
0x17ef   :  { %3092 = vmatprep.subr.mxu0 %v3262_v0 }
0x1897   :  { %v1936_v35 = vpop.f32.mrf.mxu0 }
0x1898   :  { %v1937_v38 = vadd.f32 %v2572_v33, %v1936_v35 }
0x1899   :  { %v3023_v39 = vpop.f32.mrf.mxu0 }
0x189a   :  { %1941 = vst.msk [vmem:[%s4148_s10] sm:$0xff] %vm1940_vm4, %v1937_v38 }
0x18a7   :  { %v2012_v58 = vpop.f32.mrf.mxu0 }
0x18a8   :  { %v2013_v59 = vadd.f32 %v3972_v40, %v2012_v58 }
0x18a9   :  { %v3042_v60 = vpop.f32.mrf.mxu0 }
0x18aa   :  { %2023 = vrot.lane.b32.xlu1 %v2013_v59, %s3266_s29  ;;  %v2575_v48 = vmul.f32 -1.442695, %v2013_v59 }
0x18ac   :  { %3224 = vpow2.f32 %v2575_v48 }
0x18b9   :  { %v3225_v61 = vpop.eup %3224 }
0x18ba   :  { %v2019_v62 = vadd.f32 1.0, %v3225_v61 }
0x18bc   :  { %3226 = vrcp.f32 %v2019_v62 }
0x18c9   :  { %v3227_v63 = vpop.eup %3226 }
0x18ca   :  { %v2033_v1 = vsub.f32 1.0, %v3227_v63  ;;  %v2039_v14 = vmul.f32 %v3227_v63, %v3866_v17  ;;  %v4063_v17 = vld [vmem:[%s4145_s5 + $0x2] ss:$0 sm:$0xff] }
0x191c   :  { %v2024_v2 = vpop.permute.xlu1 %2023 }
0x191d   :  { %v2026_v4 = vmul.f32 %v3227_v63, %v2024_v2 }
0x191f   :  { %2028 = vrot.lane.b32.xlu0 %v2026_v4, %s3264_s15 }
0x1991   :  { %v2029_v52 = vpop.permute.xlu0 %2028 }
0x1992   :  { %v2031_v49 = vadd.f32 %v2029_v52, %v2013_v59 }
0x1994   :  { %3228 = vtanh.f32 %v2031_v49 }
0x19a1   :  { %v3229_v13 = vpop.eup %3228 }
0x19a2   :  { %2035 = vrot.lane.b32.xlu1 %v3229_v13, %s3265_s21 }
0x1a14   :  { %v2036_v19 = vpop.permute.xlu1 %2035 }
0x1a15   :  { %v2038_v53 = vmul.f32 %v2036_v19, %v2033_v1 }
0x1a17   :  { %v4035_v20 = vadd.f32 %v2039_v14, %v2038_v53 }
0x1a19   :  { %2042 = vrot.lane.b32.xlu0 %v4035_v20, %s3265_s21 }
0x1a8b   :  { %v2043_v3 = vpop.permute.xlu0 %2042 }
0x1a8c   :  { %v2045_v21 = vsel %vm248_vm2, %v2043_v3, %v3895_v45 }
0x1a8d   :  { %3060 = vmatmul.mubr.msk.f32.vlgmr.msra.gmra.mxu1 %vm353_vm3, %v2045_v21  ;;  %v2531_v21 = vld [vmem:[%s4150_s9] ss:$0 sm:$0xff] }
0x1a8e   :  { %3074 = vmatpush3.msra.mxu1 %v3902_v46  ;;  %3089 = vmatprep.mubr.msk.f32.mxu1 %vm3263_vm0, %v3262_v0 }
0x1a8f   :  { %3075 = vmatprep.subr.mxu1 %v3262_v0 }
0x1a90   :  { %3076 = vmatpush3.msra.mxu1 %v3908_v54 }
0x1a91   :  { %3077 = vmatprep.subr.mxu1 %v3262_v0 }
0x1a92   :  { %3078 = vmatpush3.msra.mxu1 %v3917_v51 }
0x1a93   :  { %3079 = vmatprep.subr.mxu1 %v3262_v0 }
0x1a94   :  { %3080 = vmatpush3.msra.mxu1 %v3924_v55 }
0x1a95   :  { %3081 = vmatprep.subr.mxu1 %v3262_v0 }
0x1a96   :  { %3082 = vmatpush3.msra.mxu1 %v3931_v56 }
0x1a97   :  { %3083 = vmatprep.subr.mxu1 %v3262_v0 }
0x1a98   :  { %3084 = vmatpush3.msra.mxu1 %v3938_v57 }
0x1a99   :  { %3085 = vmatprep.subr.mxu1 %v3262_v0 }
0x1a9a   :  { %3086 = vmatpush3.msra.mxu1 %v3945_v28 }
0x1a9b   :  { %3087 = vmatprep.subr.mxu1 %v3262_v0 }
0x1a9c   :  { %3088 = vmatpush3.msra.mxu1 %v3952_v29 }
0x1a9d   :  { %3111 = vmatprep.subr.mxu1 %v3262_v0 }
0x1b4d   :  { %v2115_v22 = vpop.f32.mrf.mxu1 }
0x1b4e   :  { %v2116_v6 = vadd.f32 %v4063_v17, %v2115_v22 }
0x1b4f   :  { %v3061_v23 = vpop.f32.mrf.mxu1 }
0x1b50   :  { %2126 = vrot.lane.b32.xlu1 %v2116_v6, %s3266_s29  ;;  %v2577_v24 = vmul.f32 -1.442695, %v2116_v6 }
0x1b52   :  { %3230 = vpow2.f32 %v2577_v24 }
0x1b5f   :  { %v3231_v8 = vpop.eup %3230 }
0x1b60   :  { %v2122_v25 = vadd.f32 1.0, %v3231_v8 }
0x1b62   :  { %3232 = vrcp.f32 %v2122_v25 }
0x1b6f   :  { %v3233_v26 = vpop.eup %3232 }
0x1b70   :  { %v2136_v42 = vsub.f32 1.0, %v3233_v26  ;;  %v2142_v44 = vmul.f32 %v3233_v26, %v3895_v45 }
0x1bc2   :  { %v2127_v27 = vpop.permute.xlu1 %2126 }
0x1bc3   :  { %v2129_v30 = vmul.f32 %v3233_v26, %v2127_v27 }
0x1bc5   :  { %2131 = vrot.lane.b32.xlu0 %v2129_v30, %s3264_s15 }
0x1c37   :  { %v2132_v50 = vpop.permute.xlu0 %2131 }
0x1c38   :  { %v2134_v12 = vadd.f32 %v2132_v50, %v2116_v6 }
0x1c3a   :  { %3234 = vtanh.f32 %v2134_v12 }
0x1c47   :  { %v3235_v41 = vpop.eup %3234 }
0x1c48   :  { %2138 = vrot.lane.b32.xlu1 %v3235_v41, %s3265_s21 }
0x1cba   :  { %v2139_v43 = vpop.permute.xlu1 %2138 }
0x1cbb   :  { %v2141_v46 = vmul.f32 %v2139_v43, %v2136_v42 }
0x1cbd   :  { %v4086_v47 = vadd.f32 %v2142_v44, %v2141_v46 }
0x1cbf   :  { %2145 = vrot.lane.b32.xlu0 %v4086_v47, %s3265_s21 }
0x1d31   :  { %v2146_v54 = vpop.permute.xlu0 %2145 }
0x1d32   :  { %v2220_v51 = vsel %vm248_vm2, %v2146_v54, %v4035_v20  ;;  %3071 = vmatmul.mubr.msk.f32.vlgmr.msra.gmra.mxu0 %vm248_vm2, %v2146_v54 }
0x1d33   :  { %3090 = vmatmul.mubr.msk.f32.vlgmr.msra.gmra.mxu1 %vm353_vm3, %v2220_v51  ;;  %3093 = vmatpush3.msra.mxu0 %v3980_v5 }
0x1d34   :  { %3094 = vmatprep.subr.mxu0 %v3262_v0  ;;  %3108 = vmatprep.mubr.msk.f32.mxu0 %vm3263_vm0, %v3262_v0 }
0x1d35   :  { %3095 = vmatpush3.msra.mxu0 %v3985_v7  ;;  %3112 = vmatpush3.msra.mxu1 %v98_v32 }
0x1d36   :  { %3096 = vmatprep.subr.mxu0 %v3262_v0  ;;  %3113 = vmatprep.subr.mxu1 %v3262_v0 }
0x1d37   :  { %3097 = vmatpush3.msra.mxu0 %v3992_v10  ;;  %3114 = vmatpush3.msra.mxu1 %v97_v34 }
0x1d38   :  { %3098 = vmatprep.subr.mxu0 %v3262_v0  ;;  %3115 = vmatprep.subr.mxu1 %v3262_v0 }
0x1d39   :  { %3099 = vmatpush3.msra.mxu0 %v3999_v11  ;;  %3116 = vmatpush3.msra.mxu1 %v96_v36 }
0x1d3a   :  { %3100 = vmatprep.subr.mxu0 %v3262_v0  ;;  %3117 = vmatprep.subr.mxu1 %v3262_v0 }
0x1d3b   :  { %3101 = vmatpush3.msra.mxu0 %v4006_v9  ;;  %3118 = vmatpush3.msra.mxu1 %v95_v37 }
0x1d3c   :  { %3102 = vmatprep.subr.mxu0 %v3262_v0  ;;  %3119 = vmatprep.mubr.msk.f32.mxu1 %vm3263_vm0, %v3262_v0 }
0x1d3d   :  { %3103 = vmatpush3.msra.mxu0 %v4013_v15 }
0x1d3e   :  { %3104 = vmatprep.subr.mxu0 %v3262_v0 }
0x1d3f   :  { %3105 = vmatpush3.msra.mxu0 %v4021_v16 }
0x1d40   :  { %3106 = vmatprep.subr.mxu0 %v3262_v0 }
0x1d41   :  { %3107 = vmatpush3.msra.mxu0 %v4030_v18 }
0x1df2   :  { %v2215_v45 = vpop.f32.mrf.mxu0 }
0x1df3   :  { %v2290_v55 = vpop.f32.mrf.mxu1  ;;  %v2216_v23 = vadd.f32 %v2531_v21, %v2215_v45 }
0x1df4   :  { %v2291_v56 = vadd.f32 %v3972_v40, %v2290_v55  ;;  %v3072_v57 = vpop.f32.mrf.mxu0 }
0x1df5   :  { %v3091_v28 = vpop.f32.mrf.mxu1 }
0x1df6   :  { %2301 = vrot.lane.b32.xlu1 %v2291_v56, %s3266_s29  ;;  %v2580_v29 = vmul.f32 -1.442695, %v2291_v56 }
0x1df8   :  { %3236 = vpow2.f32 %v2580_v29 }
0x1e05   :  { %v3237_v31 = vpop.eup %3236 }
0x1e06   :  { %v2297_v33 = vadd.f32 1.0, %v3237_v31 }
0x1e08   :  { %3238 = vrcp.f32 %v2297_v33 }
0x1e15   :  { %v3239_v35 = vpop.eup %3238 }
0x1e16   :  { %v2311_v40 = vsub.f32 1.0, %v3239_v35  ;;  %v2317_v48 = vmul.f32 %v3239_v35, %v4035_v20 }
0x1e68   :  { %v2302_v38 = vpop.permute.xlu1 %2301 }
0x1e69   :  { %v2304_v39 = vmul.f32 %v3239_v35, %v2302_v38 }
0x1e6b   :  { %2306 = vrot.lane.b32.xlu0 %v2304_v39, %s3264_s15 }
0x1edd   :  { %v2307_v0 = vpop.permute.xlu0 %2306 }
0x1ede   :  { %v2309_v58 = vadd.f32 %v2307_v0, %v2291_v56 }
0x1ee0   :  { %3240 = vtanh.f32 %v2309_v58 }
0x1eed   :  { %v3241_v59 = vpop.eup %3240 }
0x1eee   :  { %2313 = vrot.lane.b32.xlu1 %v3241_v59, %s3265_s21 }
0x1f60   :  { %v2314_v60 = vpop.permute.xlu1 %2313 }
0x1f61   :  { %v2316_v61 = vmul.f32 %v2314_v60, %v2311_v40 }
0x1f63   :  { %v2318_v62 = vadd.f32 %v2317_v48, %v2316_v61 }
0x1f65   :  { %2320 = vrot.lane.b32.xlu0 %v2318_v62, %s3265_s21 }
0x1fd7   :  { %v2321_v63 = vpop.permute.xlu0 %2320 }
0x1fd8   :  { %v2323_v2 = vsel %vm248_vm2, %v2321_v63, %v4086_v47 }
0x1fd9   :  { %3109 = vmatmul.mubr.msk.f32.vlgmr.msra.gmra.mxu0 %vm353_vm3, %v2323_v2 }
0x2099   :  { %v2393_v4 = vpop.f32.mrf.mxu0 }
0x209a   :  { %v2394_v52 = vadd.f32 %v4063_v17, %v2393_v4 }
0x209b   :  { %v3110_v49 = vpop.f32.mrf.mxu0 }
0x209c   :  { %2404 = vrot.lane.b32.xlu1 %v2394_v52, %s3266_s29  ;;  %v2582_v5 = vmul.f32 -1.442695, %v2394_v52 }
0x209e   :  { %3242 = vpow2.f32 %v2582_v5 }
0x20ab   :  { %v3243_v7 = vpop.eup %3242 }
0x20ac   :  { %v2400_v10 = vadd.f32 1.0, %v3243_v7 }
0x20ae   :  { %3244 = vrcp.f32 %v2400_v10 }
0x20bb   :  { %v3245_v11 = vpop.eup %3244 }
0x20bc   :  { %v2414_v1 = vsub.f32 1.0, %v3245_v11  ;;  %v2420_v14 = vmul.f32 %v3245_v11, %v4086_v47 }
0x210e   :  { %v2405_v9 = vpop.permute.xlu1 %2404 }
0x210f   :  { %v2407_v13 = vmul.f32 %v3245_v11, %v2405_v9 }
0x2111   :  { %2409 = vrot.lane.b32.xlu0 %v2407_v13, %s3264_s15  ;;  %s3267_s15 = smov 16  }
0x2183   :  { %v2410_v15 = vpop.permute.xlu0 %2409 }
0x2184   :  { %v2412_v16 = vadd.f32 %v2410_v15, %v2394_v52 }
0x2186   :  { %3246 = vtanh.f32 %v2412_v16 }
0x2193   :  { %v3247_v18 = vpop.eup %3246 }
0x2194   :  { %2416 = vrot.lane.b32.xlu1 %v3247_v18, %s3265_s21 }
0x2206   :  { %v2417_v19 = vpop.permute.xlu1 %2416 }
0x2207   :  { %v2419_v53 = vmul.f32 %v2417_v19, %v2414_v1 }
0x2209   :  { %v2421_v20 = vadd.f32 %v2420_v14, %v2419_v53 }
0x220b   :  { %2423 = vrot.lane.b32.xlu0 %v2421_v20, %s3265_s21 }
0x227d   :  { %v2424_v3 = vpop.permute.xlu0 %2423 }
0x227e   :  { %3120 = vmatmul.mubr.msk.f32.vlgmr.msra.gmra.mxu1 %vm248_vm2, %v2424_v3 }
0x233e   :  { %v2493_v17 = vpop.f32.mrf.mxu1 }
0x233f   :  { %v2494_v22 = vadd.f32 %v2531_v21, %v2493_v17 }
0x2340   :  { %v3121_v6 = vpop.f32.mrf.mxu1 }
0x2341   :  { %2498 = vrot.lane.b32.xlu1 %v2494_v22, %s3267_s15 }
0x23b3   :  { %v2499_v24 = vpop.permute.xlu1 %2498 }
0x23b4   :  { %v2501_v8 = vsel %vm118_vm1, %v2216_v23, %v2499_v24 }
0x23b5   :  { %2502 = vst.msk [vmem:[%s4151_s11] sm:$0xff] %vm248_vm2, %v2501_v8 }

</bundles_post_ra>
